<compile_context>
chip_gen: v7x
topology: tpu7x:2x2x1
jax: 0.10.0
libtpu: 0.0.40
codegen_flags: <defaults>
</compile_context>

<pallas_src>
import jax
import jax.numpy as jnp
from jax.experimental import pallas as pl
from jax.experimental.pallas import tpu as pltpu

IN_DIM = 2048     # fc1.in_features (fixed by the PyTorch module)
OUT_DIM = 10      # fc2.out_features
OUT_PAD = 128     # lane-dense padded output width


# ---------------------------------------------------------------------------
# Kernels
# ---------------------------------------------------------------------------
def ffn_kernel_resident(x_ref, w1_ref, b1_ref, w2_ref, b2_ref, o_ref):
    """Whole hidden dim resident in VMEM: (x @ W1 + b1) -> ReLU -> @ W2 + b2."""
    x = x_ref[...].astype(w1_ref.dtype)                   # f32 -> bf16 cast on VPU
    h = jnp.dot(x, w1_ref[...], preferred_element_type=jnp.float32)
    h = jnp.maximum(h + b1_ref[...], 0.0)                 # bias + ReLU in f32
    y = jnp.dot(h.astype(w2_ref.dtype), w2_ref[...],
                preferred_element_type=jnp.float32)
    o_ref[...] = (y + b2_ref[...]).astype(o_ref.dtype)


def ffn_kernel_htiled(x_ref, w1_ref, b1_ref, w2_ref, b2_ref, o_ref, acc_ref):
    """Hidden dim tiled along grid axis 1; (tm, OUT_PAD) f32 accumulator."""
    h_idx = pl.program_id(1)

    @pl.when(h_idx == 0)
    def _():
        acc_ref[...] = jnp.zeros_like(acc_ref)

    x = x_ref[...].astype(w1_ref.dtype)                   # f32 -> bf16 cast on VPU
    h = jnp.dot(x, w1_ref[...], preferred_element_type=jnp.float32)
    h = jnp.maximum(h + b1_ref[...], 0.0)
    acc_ref[...] += jnp.dot(h.astype(w2_ref.dtype), w2_ref[...],
                            preferred_element_type=jnp.float32)

    @pl.when(h_idx == pl.num_programs(1) - 1)
    def _():
        o_ref[...] = (acc_ref[...] + b2_ref[...]).astype(o_ref.dtype)


# ---------------------------------------------------------------------------
# One-time parameter preparation (hoisted out of the per-call path)
# ---------------------------------------------------------------------------
def prepare_params(w1, b1, w2, b2, *, compute_dtype=jnp.bfloat16):
    """Cast weights to bf16 and pad once at init time.

    * hidden dim H -> Hp (multiple of 128): lane alignment + clean H tiling
    * output dim 10 -> 128: lane-dense unmasked stores
    Padded hidden units contribute exact zeros; padded outputs are sliced off.
    """
    H = w1.shape[1]
    assert w1.shape == (IN_DIM, H) and w2.shape == (H, OUT_DIM)
    Hp = pl.cdiv(H, 128) * 128
    w1c = jnp.pad(w1, ((0, 0), (0, Hp - H))).astype(compute_dtype)
    b1p = jnp.pad(b1.reshape(1, H), ((0, 0), (0, Hp - H))).astype(jnp.float32)
    w2p = jnp.pad(w2, ((0, Hp - H), (0, OUT_PAD - OUT_DIM))).astype(compute_dtype)
    b2p = jnp.pad(b2.reshape(1, OUT_DIM),
                  ((0, 0), (0, OUT_PAD - OUT_DIM))).astype(jnp.float32)
    return w1c, b1p, w2p, b2p


def _vmem_budget_bytes():
    # Generation-aware budget: 75% of per-core VMEM leaves headroom for Mosaic
    # internal scratch/semaphores (~48 MiB on v7x, ~96 MiB on v5e/v6e).
    try:
        cap = pltpu.get_tpu_info().vmem_capacity_bytes
    except Exception:
        cap = 64 * 1024 * 1024          # conservative fallback (v7x per-core VMEM)
    return int(cap) * 3 // 4


# ---------------------------------------------------------------------------
# Forward wrapper
# ---------------------------------------------------------------------------
def ffn_forward(x, params, *, batch_tile=512, h_tile=512, force_h_tiling=False):
    """x: [B, 2048] f32, params from prepare_params() -> [B, 10] f32."""
    w1c, b1p, w2p, b2p = params
    B, D = x.shape
    Hp = w1c.shape[1]
    assert D == IN_DIM

    budget = _vmem_budget_bytes()
    wbytes = w1c.dtype.itemsize

    # ---- path choice: resident weights vs. H-tiled accumulator --------------
    weight_bytes = (D * Hp + Hp * OUT_PAD) * wbytes + (Hp + OUT_PAD) * 4
    use_h_tiling = force_h_tiling or (2 * weight_bytes > budget // 2)

    if use_h_tiling:
        h_blk = max(128, min((h_tile // 128) * 128, Hp))
        while Hp % h_blk:                       # must evenly divide 128-aligned Hp
            h_blk -= 128
    else:
        h_blk = Hp

    # ---- batch tile: multiple of 8, clamped to batch, shrunk to fit VMEM ----
    tm = max(8, min((batch_tile // 8) * 8, pl.cdiv(B, 8) * 8))
    # Keep >=4 grid steps for large batches so each megacore TensorCore gets
    # >=2 steps and can overlap its own x DMA with compute (matters on v7x).
    if B >= 4 * 128:
        tm = min(tm, max(128, pl.cdiv(pl.cdiv(B, 4), 8) * 8))

    def footprint(tm_):
        wblk = (D * h_blk + h_blk * OUT_PAD) * wbytes + h_blk * 4 + OUT_PAD * 4
        tiles = 2 * tm_ * D * 4 + 2 * tm_ * OUT_PAD * 4   # x + out, double-buffered f32
        acc = tm_ * OUT_PAD * 4 if use_h_tiling else 0
        return 2 * wblk + tiles + acc                      # worst case: weights x2

    while tm > 8 and footprint(tm) > budget:
        tm = max(8, ((tm // 2) // 8) * 8)

    Bp = pl.cdiv(B, tm) * tm
    xp = jnp.pad(x, ((0, Bp - B), (0, 0))) if Bp != B else x   # single pad, only if needed

    grid_b = Bp // tm
    nh = Hp // h_blk

    # Advisory cost estimate (weights re-streamed per batch tile when H-tiled).
    w_stream = grid_b if use_h_tiling else 1
    cost = pl.CostEstimate(
        flops=2 * Bp * D * Hp + 2 * Bp * Hp * OUT_PAD,
        transcendentals=0,
        bytes_accessed=Bp * D * 4 + Bp * OUT_PAD * 4 + w_stream * weight_bytes)

    def build(single_buffer_weights):
        if use_h_tiling:
            grid = (grid_b, nh)
            in_specs = [
                pl.BlockSpec((tm, D), lambda i, h: (i, 0)),           # x (f32, streamed)
                pl.BlockSpec((D, h_blk), lambda i, h: (0, h)),        # W1 column block
                pl.BlockSpec((1, h_blk), lambda i, h: (0, h)),        # b1 block
                pl.BlockSpec((h_blk, OUT_PAD), lambda i, h: (h, 0)),  # W2 row block
                pl.BlockSpec((1, OUT_PAD), lambda i, h: (0, 0)),      # b2
            ]
            out_spec = pl.BlockSpec((tm, OUT_PAD), lambda i, h: (i, 0))
            scratch = [pltpu.VMEM((tm, OUT_PAD), jnp.float32)]
            kernel = ffn_kernel_htiled
            dims = ("parallel", "arbitrary")
        else:
            # Grid-invariant weights -> request single buffering to halve their
            # VMEM footprint (falls back gracefully if unsupported).
            def wspec(shape):
                if single_buffer_weights:
                    return pl.BlockSpec(shape, lambda i: (0, 0),
                                        pipeline_mode=pl.Buffered(1))
                return pl.BlockSpec(shape, lambda i: (0, 0))

            grid = (grid_b,)
            in_specs = [
                pl.BlockSpec((tm, D), lambda i: (i, 0)),              # x (f32, streamed)
                wspec((D, Hp)),                                       # W1 (resident)
                wspec((1, Hp)),                                       # b1 (resident)
                wspec((Hp, OUT_PAD)),                                 # W2 (resident)
                wspec((1, OUT_PAD)),                                  # b2 (resident)
            ]
            out_spec = pl.BlockSpec((tm, OUT_PAD), lambda i: (i, 0))
            scratch = []
            kernel = ffn_kernel_resident
            dims = ("parallel",)

        return pl.pallas_call(
            kernel,
            out_shape=jax.ShapeDtypeStruct((Bp, OUT_PAD), jnp.float32),
            grid_spec=pltpu.PrefetchScalarGridSpec(
                num_scalar_prefetch=0,
                grid=grid,
                in_specs=in_specs,
                out_specs=out_spec,
                scratch_shapes=scratch,
            ),
            compiler_params=pltpu.CompilerParams(
                dimension_semantics=dims,
                vmem_limit_bytes=budget,
            ),
            cost_estimate=cost,
        )

    try:
        out = build(single_buffer_weights=True)(xp, w1c, b1p, w2p, b2p)
    except Exception:
        # pl.Buffered(1) on grid-invariant operands not accepted by this
        # JAX/Mosaic build for top-level pallas_call -> default buffering.
        out = build(single_buffer_weights=False)(xp, w1c, b1p, w2p, b2p)

    # TODO(synk): optional fp8 weight path for v7x MXU not implemented (bf16 kept).
    return out[:B, :OUT_DIM]


# ---------------------------------------------------------------------------
# Demo / self-test
# ---------------------------------------------------------------------------
def init_params(key, hidden_dim, dtype=jnp.float32):
    # Mimics nn.Linear's U(-1/sqrt(fan_in), 1/sqrt(fan_in)) init.
    k1, k2, k3, k4 = jax.random.split(key, 4)
    bound1 = 1.0 / (IN_DIM ** 0.5)
    bound2 = 1.0 / (hidden_dim ** 0.5)
    w1 = jax.random.uniform(k1, (IN_DIM, hidden_dim), dtype, -bound1, bound1)
    b1 = jax.random.uniform(k2, (hidden_dim,), dtype, -bound1, bound1)
    w2 = jax.random.uniform(k3, (hidden_dim, OUT_DIM), dtype, -bound2, bound2)
    b2 = jax.random.uniform(k4, (OUT_DIM,), dtype, -bound2, bound2)
    return w1, b1, w2, b2


def reference_fwd(x, w1, b1, w2, b2):
    # Same numerics as the kernel: bf16 operands on the MXU, f32 accumulation,
    # f32 bias adds. (~1e-3 drift vs. a pure-f32 PyTorch FFNModel is expected.)
    h = jnp.dot(x.astype(jnp.bfloat16), w1.astype(jnp.bfloat16),
                preferred_element_type=jnp.float32) + b1.reshape(1, -1)
    h = jnp.maximum(h, 0.0)
    return jnp.dot(h.astype(jnp.bfloat16), w2.astype(jnp.bfloat16),
                   preferred_element_type=jnp.float32) + b2.reshape(1, -1)


if __name__ == "__main__":
    B = 16
    key = jax.random.PRNGKey(0)
    kx, kp1, kp2 = jax.random.split(key, 3)
    x = jax.random.normal(kx, (B, IN_DIM), jnp.float32)

    # Path 1: small hidden dim -> fully-resident-weights kernel (default knobs).
    H1 = 128
    w1, b1, w2, b2 = init_params(kp1, H1)
    params1 = prepare_params(w1, b1, w2, b2)
    out1 = jax.block_until_ready(ffn_forward(x, params1))
    assert out1.shape == (B, OUT_DIM)
    ref1 = reference_fwd(x, w1, b1, w2, b2)
    assert jnp.allclose(out1, ref1, atol=2e-3, rtol=2e-3), "resident path mismatch"

    # Path 2: force the H-tiled accumulator kernel at small shapes
    # (exercises the large-H / v7x code path: grid (2 batch tiles, 2 H blocks)).
    H2 = 256
    w1, b1, w2, b2 = init_params(kp2, H2)
    params2 = prepare_params(w1, b1, w2, b2)
    out2 = jax.block_until_ready(
        ffn_forward(x, params2, batch_tile=8, h_tile=128, force_h_tiling=True))
    assert out2.shape == (B, OUT_DIM)
    ref2 = reference_fwd(x, w1, b1, w2, b2)
    assert jnp.allclose(out2, ref2, atol=2e-3, rtol=2e-3), "H-tiled path mismatch"

    print("KERNEL_OK")
</pallas_src>

<mosaic_0001>
module attributes {stable_mosaic.version = 11 : i64} {
  func.func @ffn_kernel_resident(%arg0: i32, %arg1: memref<16x2048xf32, #tpu.memory_space<vmem>>, %arg2: memref<2048x128xbf16, #tpu.memory_space<vmem>>, %arg3: memref<1x128xf32, #tpu.memory_space<vmem>>, %arg4: memref<128x128xbf16, #tpu.memory_space<vmem>>, %arg5: memref<1x128xf32, #tpu.memory_space<vmem>>, %arg6: memref<16x128xf32, #tpu.memory_space<vmem>>) attributes {dimension_semantics = [#tpu.dimension_semantics<parallel>], iteration_bounds = array<i64: 1>, scalar_prefetch = 0 : i64, scratch_operands = 0 : i64, tpu.core_type = #tpu.core_type<tc>, window_params = [{transform_indices = @transform_0, window_bounds = array<i64: 16, 2048>}, {pipeline_mode = #tpu.pipeline_mode<synchronous>, transform_indices = @transform_1, window_bounds = array<i64: 2048, 128>}, {pipeline_mode = #tpu.pipeline_mode<synchronous>, transform_indices = @transform_2, window_bounds = array<i64: 1, 128>}, {pipeline_mode = #tpu.pipeline_mode<synchronous>, transform_indices = @transform_3, window_bounds = array<i64: 128, 128>}, {pipeline_mode = #tpu.pipeline_mode<synchronous>, transform_indices = @transform_4, window_bounds = array<i64: 1, 128>}, {transform_indices = @transform_5, window_bounds = array<i64: 16, 128>}]} {
    %c0 = arith.constant 0 : index
    %c0_0 = arith.constant 0 : index
    %0 = vector.load %arg1[%c0, %c0_0] : memref<16x2048xf32, #tpu.memory_space<vmem>>, vector<16x2048xf32>
    %1 = arith.truncf %0 : vector<16x2048xf32> to vector<16x2048xbf16>
    %c0_1 = arith.constant 0 : index
    %c0_2 = arith.constant 0 : index
    %2 = vector.load %arg2[%c0_1, %c0_2] : memref<2048x128xbf16, #tpu.memory_space<vmem>>, vector<2048x128xbf16>
    %cst = arith.constant dense<0.000000e+00> : vector<16x128xf32>
    %3 = tpu.matmul %1, %2, %cst {dimension_numbers = #tpu.dot_dimension_numbers<[1], [0], [0], [1], [0, 0, 1, 1], [], []>} : vector<16x2048xbf16>, vector<2048x128xbf16>, vector<16x128xf32> -> vector<16x128xf32>
    %c0_3 = arith.constant 0 : index
    %c0_4 = arith.constant 0 : index
    %4 = vector.load %arg3[%c0_3, %c0_4] : memref<1x128xf32, #tpu.memory_space<vmem>>, vector<1x128xf32>
    %5 = vector.broadcast %4 : vector<1x128xf32> to vector<16x128xf32>
    %6 = arith.addf %3, %5 : vector<16x128xf32>
    %cst_5 = arith.constant 0.000000e+00 : f32
    %7 = vector.broadcast %cst_5 : f32 to vector<16x128xf32>
    %8 = arith.maximumf %6, %7 : vector<16x128xf32>
    %9 = arith.truncf %8 : vector<16x128xf32> to vector<16x128xbf16>
    %c0_6 = arith.constant 0 : index
    %c0_7 = arith.constant 0 : index
    %10 = vector.load %arg4[%c0_6, %c0_7] : memref<128x128xbf16, #tpu.memory_space<vmem>>, vector<128x128xbf16>
    %cst_8 = arith.constant dense<0.000000e+00> : vector<16x128xf32>
    %11 = tpu.matmul %9, %10, %cst_8 {dimension_numbers = #tpu.dot_dimension_numbers<[1], [0], [0], [1], [0, 0, 1, 1], [], []>} : vector<16x128xbf16>, vector<128x128xbf16>, vector<16x128xf32> -> vector<16x128xf32>
    %c0_9 = arith.constant 0 : index
    %c0_10 = arith.constant 0 : index
    %12 = vector.load %arg5[%c0_9, %c0_10] : memref<1x128xf32, #tpu.memory_space<vmem>>, vector<1x128xf32>
    %13 = vector.broadcast %12 : vector<1x128xf32> to vector<16x128xf32>
    %14 = arith.addf %11, %13 : vector<16x128xf32>
    %c0_11 = arith.constant 0 : index
    %c0_12 = arith.constant 0 : index
    %15 = vector.load %arg6[%c0_11, %c0_12] : memref<16x128xf32, #tpu.memory_space<vmem>>, vector<16x128xf32>
    tpu.vector_store %arg6[%c0_11, %c0_12], %14 {strides = array<i32>} : memref<16x128xf32, #tpu.memory_space<vmem>>, vector<16x128xf32>,
    return
  }
  func.func @transform_0(%arg0: i32) -> (i32, i32) {
    %c0_i32 = arith.constant 0 : i32
    %c0_i32_0 = arith.constant 0 : i32
    return %arg0, %c0_i32 : i32, i32
  }
  func.func @transform_1(%arg0: i32) -> (i32, i32) {
    %c0_i32 = arith.constant 0 : i32
    %c0_i32_0 = arith.constant 0 : i32
    %c0_i32_1 = arith.constant 0 : i32
    return %c0_i32, %c0_i32_0 : i32, i32
  }
  func.func @transform_2(%arg0: i32) -> (i32, i32) {
    %c0_i32 = arith.constant 0 : i32
    %c0_i32_0 = arith.constant 0 : i32
    %c0_i32_1 = arith.constant 0 : i32
    return %c0_i32, %c0_i32_0 : i32, i32
  }
  func.func @transform_3(%arg0: i32) -> (i32, i32) {
    %c0_i32 = arith.constant 0 : i32
    %c0_i32_0 = arith.constant 0 : i32
    %c0_i32_1 = arith.constant 0 : i32
    return %c0_i32, %c0_i32_0 : i32, i32
  }
  func.func @transform_4(%arg0: i32) -> (i32, i32) {
    %c0_i32 = arith.constant 0 : i32
    %c0_i32_0 = arith.constant 0 : i32
    %c0_i32_1 = arith.constant 0 : i32
    return %c0_i32, %c0_i32_0 : i32, i32
  }
  func.func @transform_5(%arg0: i32) -> (i32, i32) {
    %c0_i32 = arith.constant 0 : i32
    %c0_i32_0 = arith.constant 0 : i32
    return %arg0, %c0_i32 : i32, i32
  }
}

module attributes {stable_mosaic.version = 11 : i64} {
  func.func @ffn_kernel_resident(%arg0: i32, %arg1: memref<16x2048xf32, #tpu.memory_space<vmem>>, %arg2: memref<2048x128xbf16, #tpu.memory_space<vmem>>, %arg3: memref<1x128xf32, #tpu.memory_space<vmem>>, %arg4: memref<128x128xbf16, #tpu.memory_space<vmem>>, %arg5: memref<1x128xf32, #tpu.memory_space<vmem>>, %arg6: memref<16x128xf32, #tpu.memory_space<vmem>>) attributes {dimension_semantics = [#tpu.dimension_semantics<parallel>], iteration_bounds = array<i64: 1>, scalar_prefetch = 0 : i64, scratch_operands = 0 : i64, tpu.core_type = #tpu.core_type<tc>, window_params = [{transform_indices = @transform_0, window_bounds = array<i64: 16, 2048>}, {pipeline_mode = #tpu.pipeline_mode<synchronous>, transform_indices = @transform_1, window_bounds = array<i64: 2048, 128>}, {pipeline_mode = #tpu.pipeline_mode<synchronous>, transform_indices = @transform_2, window_bounds = array<i64: 1, 128>}, {pipeline_mode = #tpu.pipeline_mode<synchronous>, transform_indices = @transform_3, window_bounds = array<i64: 128, 128>}, {pipeline_mode = #tpu.pipeline_mode<synchronous>, transform_indices = @transform_4, window_bounds = array<i64: 1, 128>}, {transform_indices = @transform_5, window_bounds = array<i64: 16, 128>}]} {
    %c0 = arith.constant 0 : index
    %c0_0 = arith.constant 0 : index
    %0 = vector.load %arg1[%c0, %c0_0] : memref<16x2048xf32, #tpu.memory_space<vmem>>, vector<16x2048xf32>
    %1 = arith.truncf %0 : vector<16x2048xf32> to vector<16x2048xbf16>
    %c0_1 = arith.constant 0 : index
    %c0_2 = arith.constant 0 : index
    %2 = vector.load %arg2[%c0_1, %c0_2] : memref<2048x128xbf16, #tpu.memory_space<vmem>>, vector<2048x128xbf16>
    %cst = arith.constant dense<0.000000e+00> : vector<16x128xf32>
    %3 = tpu.matmul %1, %2, %cst {dimension_numbers = #tpu.dot_dimension_numbers<[1], [0], [0], [1], [0, 0, 1, 1], [], []>} : vector<16x2048xbf16>, vector<2048x128xbf16>, vector<16x128xf32> -> vector<16x128xf32>
    %c0_3 = arith.constant 0 : index
    %c0_4 = arith.constant 0 : index
    %4 = vector.load %arg3[%c0_3, %c0_4] : memref<1x128xf32, #tpu.memory_space<vmem>>, vector<1x128xf32>
    %5 = vector.broadcast %4 : vector<1x128xf32> to vector<16x128xf32>
    %6 = arith.addf %3, %5 : vector<16x128xf32>
    %cst_5 = arith.constant 0.000000e+00 : f32
    %7 = vector.broadcast %cst_5 : f32 to vector<16x128xf32>
    %8 = arith.maximumf %6, %7 : vector<16x128xf32>
    %9 = arith.truncf %8 : vector<16x128xf32> to vector<16x128xbf16>
    %c0_6 = arith.constant 0 : index
    %c0_7 = arith.constant 0 : index
    %10 = vector.load %arg4[%c0_6, %c0_7] : memref<128x128xbf16, #tpu.memory_space<vmem>>, vector<128x128xbf16>
    %cst_8 = arith.constant dense<0.000000e+00> : vector<16x128xf32>
    %11 = tpu.matmul %9, %10, %cst_8 {dimension_numbers = #tpu.dot_dimension_numbers<[1], [0], [0], [1], [0, 0, 1, 1], [], []>} : vector<16x128xbf16>, vector<128x128xbf16>, vector<16x128xf32> -> vector<16x128xf32>
    %c0_9 = arith.constant 0 : index
    %c0_10 = arith.constant 0 : index
    %12 = vector.load %arg5[%c0_9, %c0_10] : memref<1x128xf32, #tpu.memory_space<vmem>>, vector<1x128xf32>
    %13 = vector.broadcast %12 : vector<1x128xf32> to vector<16x128xf32>
    %14 = arith.addf %11, %13 : vector<16x128xf32>
    %c0_11 = arith.constant 0 : index
    %c0_12 = arith.constant 0 : index
    %15 = vector.load %arg6[%c0_11, %c0_12] : memref<16x128xf32, #tpu.memory_space<vmem>>, vector<16x128xf32>
    tpu.vector_store %arg6[%c0_11, %c0_12], %14 {strides = array<i32>} : memref<16x128xf32, #tpu.memory_space<vmem>>, vector<16x128xf32>,
    return
  }
  func.func @transform_0(%arg0: i32) -> (i32, i32) {
    %c0_i32 = arith.constant 0 : i32
    %c0_i32_0 = arith.constant 0 : i32
    return %arg0, %c0_i32 : i32, i32
  }
  func.func @transform_1(%arg0: i32) -> (i32, i32) {
    %c0_i32 = arith.constant 0 : i32
    %c0_i32_0 = arith.constant 0 : i32
    %c0_i32_1 = arith.constant 0 : i32
    return %c0_i32, %c0_i32_0 : i32, i32
  }
  func.func @transform_2(%arg0: i32) -> (i32, i32) {
    %c0_i32 = arith.constant 0 : i32
    %c0_i32_0 = arith.constant 0 : i32
    %c0_i32_1 = arith.constant 0 : i32
    return %c0_i32, %c0_i32_0 : i32, i32
  }
  func.func @transform_3(%arg0: i32) -> (i32, i32) {
    %c0_i32 = arith.constant 0 : i32
    %c0_i32_0 = arith.constant 0 : i32
    %c0_i32_1 = arith.constant 0 : i32
    return %c0_i32, %c0_i32_0 : i32, i32
  }
  func.func @transform_4(%arg0: i32) -> (i32, i32) {
    %c0_i32 = arith.constant 0 : i32
    %c0_i32_0 = arith.constant 0 : i32
    %c0_i32_1 = arith.constant 0 : i32
    return %c0_i32, %c0_i32_0 : i32, i32
  }
  func.func @transform_5(%arg0: i32) -> (i32, i32) {
    %c0_i32 = arith.constant 0 : i32
    %c0_i32_0 = arith.constant 0 : i32
    return %arg0, %c0_i32 : i32, i32
  }
}

</mosaic_0001>

<bundles_post_ra>
// kernel: tpu_custom_call.1
= control target key start
LH: loop header
LB: loop body
LE: loop exit
PB: predicated region body
PF: predicated region fallthrough
CT: control target
= control target key end

     0   :  { %10 = vsyncpa [#allocation3], 0  ;;  %s2293_s0 = inlined_call_operand.hbm [shape: f32[16,2048], index: 0, kind: input, shape index: {}]   ;;  %s2294_s1 = inlined_call_operand.hbm [shape: bf16[2048,128], index: 1, kind: input, shape index: {}]   ;;  %s2295_s2 = inlined_call_operand.vmem [shape: f32[1,128], index: 2, kind: input, shape index: {}]   ;;  %s2296_s3 = inlined_call_operand.hbm [shape: bf16[128,128], index: 3, kind: input, shape index: {}]   ;;  %s2297_s4 = inlined_call_operand.vmem [shape: f32[1,128], index: 4, kind: input, shape index: {}]   ;;  %s2298_s5 = inlined_call_operand.hbm [shape: f32[16,128], index: 5, kind: output, shape index: {}]  }
   0x1   :  { %11 = vsyncpa [#allocation6], 0 }
   0x2   :  { %12 = vsyncpa [#allocation4], 0  ;;  %s2189_s18 = smov [#allocation5]   ;;  %s2095_s22 = scalar_lea.hbm %s2294_s1, 16384 }
   0x3   :  { %s30_s19 = sshll.u32 %s2189_s18, 4  ;;  %p2096_p0 = scmp.ne.s32.totalorder %s2294_s1, %s2095_s22  ;;  %s31_s19 = int_to_ptr.vmem [resolvable:$true] %s30_s19 }
   0x4   :  { %p2099_p1 = scmp.lt.u32.totalorder %s2095_s22, %s2294_s1 }
   0x6   :  { %p2101_p2 = pnand %p2099_p1, %p2096_p0 }
   0x8   :  { %2104 = shalt.err (!%p2101_p2)
}
   0x9   :  { %s2105_s27 = scalar_lea.vmem %s31_s19, 16384  ;;  %p2110_p4 = scmp.lt.s32.totalorder %s31_s19, %s31_s19 }
   0xa   :  { %p2106_p3 = scmp.ne.s32.totalorder %s31_s19, %s2105_s27  ;;  %p2111_p5 = scmp.lt.s32.totalorder %s2105_s27, %s2105_s27 }
   0xc   :  { %p2112_p6 = por %p2111_p5, %p2110_p4 }
   0xe   :  { %p2113_p7 = pnand %p2112_p6, %p2106_p3 }
  0x10   :  { %2116 = shalt.err (!%p2113_p7)
}
  0x11   :  { %s2190_s28 = smov 64   ;;  %s2191_s29 = smov 4  }
  0x12   :  { %36 = dma.hbm_to_vmem [thread:$0]  %s2294_s1, 16384, %s31_s19, [#allocation6], %s2190_s28, %s2190_s28, %s2191_s29  }
  0x13   :  { %s2192_s7 = smov [#allocation2]   ;;  %s2117_s11 = scalar_lea.hbm %s2293_s0, 4096 }
  0x14   :  { %s18_s8 = sshll.u32 %s2192_s7, 4  ;;  %p2118_p8 = scmp.ne.s32.totalorder %s2293_s0, %s2117_s11  ;;  %s19_s8 = int_to_ptr.vmem [resolvable:$true] %s18_s8 }
  0x15   :  { %p2121_p9 = scmp.lt.u32.totalorder %s2117_s11, %s2293_s0 }
  0x17   :  { %p2123_p10 = pnand %p2121_p9, %p2118_p8 }
  0x19   :  { %2126 = shalt.err (!%p2123_p10)
}
  0x1a   :  { %s2127_s16 = scalar_lea.vmem %s19_s8, 4096  ;;  %p2132_p12 = scmp.lt.s32.totalorder %s19_s8, %s19_s8 }
  0x1b   :  { %p2128_p11 = scmp.ne.s32.totalorder %s19_s8, %s2127_s16  ;;  %p2133_p13 = scmp.lt.s32.totalorder %s2127_s16, %s2127_s16 }
  0x1d   :  { %p2134_p0 = por %p2133_p13, %p2132_p12 }
  0x1f   :  { %p2135_p1 = pnand %p2134_p0, %p2128_p11 }
  0x21   :  { %2138 = shalt.err (!%p2135_p1)
}
  0x22   :  { %s2193_s1 = smov 2048   ;;  %s2194_s17 = smov 128  }
  0x23   :  { %24 = dma.hbm_to_vmem [thread:$0]  %s2293_s0, 4096, %s19_s8, [#allocation3], %s2193_s1, %s2193_s1, %s2194_s17  }
  0x24   :  { %s2195_s20 = smov [#allocation7]   ;;  %s2139_s24 = scalar_lea.hbm %s2296_s3, 1024 }
  0x25   :  { %s44_s21 = sshll.u32 %s2195_s20, 4  ;;  %p2140_p2 = scmp.ne.s32.totalorder %s2296_s3, %s2139_s24  ;;  %s45_s21 = int_to_ptr.vmem [resolvable:$true] %s44_s21 }
  0x26   :  { %p2143_p3 = scmp.lt.u32.totalorder %s2139_s24, %s2296_s3 }
  0x28   :  { %p2145_p4 = pnand %p2143_p3, %p2140_p2 }
  0x2a   :  { %2148 = shalt.err (!%p2145_p4)
}
  0x2b   :  { %s2149_s6 = scalar_lea.vmem %s45_s21, 1024  ;;  %p2154_p6 = scmp.lt.s32.totalorder %s45_s21, %s45_s21 }
  0x2c   :  { %p2150_p5 = scmp.ne.s32.totalorder %s45_s21, %s2149_s6  ;;  %p2155_p7 = scmp.lt.s32.totalorder %s2149_s6, %s2149_s6 }
  0x2e   :  { %p2156_p8 = por %p2155_p7, %p2154_p6 }
  0x30   :  { %p2157_p9 = pnand %p2156_p8, %p2150_p5 }
  0x32   :  { %2160 = shalt.err (!%p2157_p9)
}
  0x33   :  { %50 = dma.hbm_to_vmem [thread:$0]  %s2296_s3, 1024, %s45_s21, [#allocation6], %s2190_s28, %s2190_s28, %s2191_s29  }
  0x34   :  { %2183 = dma.done.wait [#allocation3], 4096  }
  0x35   :  { %2184 = vsyncadd [#allocation3], 4294963200 }
  0x36   :  { %2185 = dma.done.wait [#allocation6], 17408  }
  0x37   :  { %2186 = vsyncadd [#allocation6], 4294949888  ;;  %v1959_v0 = vld [vmem:[#allocation5 + $0x40] sm:$0xff]   ;;  %v1963_v4 = vld [vmem:[#allocation5 + $0x48] sm:$0xff]   ;;  %vm2197_vm0 = vmmov 0   ;;  %s2198_s8 = smov [#allocation8]  }
  0x38   :  { %v1960_v1 = vld [vmem:[#allocation5 + $0xc0] sm:$0xff]   ;;  %1743 = vmatprep.subr.bf16.mxu0 %v1959_v0  ;;  %v1964_v5 = vld [vmem:[#allocation5 + $0xc8] sm:$0xff]   ;;  %v1967_v8 = vld [vmem:[#allocation5 + $0x50] sm:$0xff]   ;;  %s1592_s9 = sshll.u32 %s2198_s8, 4  ;;  %s1593_s9 = int_to_ptr.vmem [resolvable:$true] %s1592_s9 }
  0x39   :  { %v1961_v2 = vld [vmem:[#allocation5] sm:$0xff]   ;;  %1765 = vmatprep.subr.bf16.mxu1 %v1960_v1  ;;  %v1965_v6 = vld [vmem:[#allocation5 + $0x8] sm:$0xff]   ;;  %v1968_v9 = vld [vmem:[#allocation5 + $0xd0] sm:$0xff]   ;;  %s2161_s10 = scalar_lea.vmem %s1593_s9, 256  ;;  %p2166_p11 = scmp.lt.s32.totalorder %s1593_s9, %s1593_s9 }
  0x3a   :  { %v1962_v3 = vld [vmem:[#allocation5 + $0x80] sm:$0xff]   ;;  %1744 = vmatpush3.bf16.msra.mxu0 %v1961_v2  ;;  %v1966_v7 = vld [vmem:[#allocation5 + $0x88] sm:$0xff]   ;;  %v1969_v10 = vld [vmem:[#allocation5 + $0x10] sm:$0xff]   ;;  %p2162_p10 = scmp.ne.s32.totalorder %s1593_s9, %s2161_s10  ;;  %p2167_p12 = scmp.lt.s32.totalorder %s2161_s10, %s2161_s10 }
  0x3b   :  { %1766 = vmatpush3.bf16.msra.mxu1 %v1962_v3  ;;  %1745 = vmatprep.subr.bf16.mxu0 %v1963_v4  ;;  %v1970_v11 = vld [vmem:[#allocation5 + $0x90] sm:$0xff]   ;;  %v1971_v12 = vld [vmem:[#allocation5 + $0x58] sm:$0xff]   ;;  %v1975_v16 = vld [vmem:[#allocation5 + $0x60] sm:$0xff]  }
  0x3c   :  { %1767 = vmatprep.subr.bf16.mxu1 %v1964_v5  ;;  %v1972_v13 = vld [vmem:[#allocation5 + $0xd8] sm:$0xff]   ;;  %v1976_v17 = vld [vmem:[#allocation5 + $0xe0] sm:$0xff]   ;;  %v1979_v20 = vld [vmem:[#allocation5 + $0x68] sm:$0xff]   ;;  %p2168_p13 = por %p2167_p12, %p2166_p11 }
  0x3d   :  { %v1973_v14 = vld [vmem:[#allocation5 + $0x18] sm:$0xff]   ;;  %v1977_v18 = vld [vmem:[#allocation5 + $0x20] sm:$0xff]   ;;  %v1980_v21 = vld [vmem:[#allocation5 + $0xe8] sm:$0xff]  }
  0x3e   :  { %1746 = vmatpush3.bf16.msra.mxu0 %v1965_v6  ;;  %v1974_v15 = vld [vmem:[#allocation5 + $0x98] sm:$0xff]   ;;  %v1978_v19 = vld [vmem:[#allocation5 + $0xa0] sm:$0xff]   ;;  %v1981_v22 = vld [vmem:[#allocation5 + $0x28] sm:$0xff]   ;;  %p2169_p0 = pnand %p2168_p13, %p2162_p10 }
  0x3f   :  { %1768 = vmatpush3.bf16.msra.mxu1 %v1966_v7  ;;  %1747 = vmatprep.subr.bf16.mxu0 %v1967_v8  ;;  %v1982_v23 = vld [vmem:[#allocation5 + $0xa8] sm:$0xff]   ;;  %v1983_v24 = vld [vmem:[#allocation5 + $0x70] sm:$0xff]   ;;  %v1987_v28 = vld [vmem:[#allocation5 + $0x78] sm:$0xff]  }
  0x40   :  { %1769 = vmatprep.subr.bf16.mxu1 %v1968_v9  ;;  %v1984_v25 = vld [vmem:[#allocation5 + $0xf0] sm:$0xff]   ;;  %v1988_v29 = vld [vmem:[#allocation5 + $0xf8] sm:$0xff]   ;;  %v64_v32 = vld [vmem:[#allocation2 + $0x8] sm:$0xff] }
  0x41   :  { %v1985_v26 = vld [vmem:[#allocation5 + $0x30] sm:$0xff]   ;;  %v1989_v30 = vld [vmem:[#allocation5 + $0x38] sm:$0xff]   ;;  %v80_v33 = vld [vmem:[#allocation2 + $0x88] sm:$0xff] }
  0x42   :  { %1748 = vmatpush3.bf16.msra.mxu0 %v1969_v10  ;;  %v1986_v27 = vld [vmem:[#allocation5 + $0xb0] sm:$0xff]   ;;  %v1990_v31 = vld [vmem:[#allocation5 + $0xb8] sm:$0xff]   ;;  %v96_v35 = vpack.c.bf16 %v80_v33, %v64_v32  ;;  %v63_v37 = vld [vmem:[#allocation2] sm:$0xff] }
  0x43   :  { %1770 = vmatpush3.bf16.msra.mxu1 %v1970_v11  ;;  %1749 = vmatprep.subr.bf16.mxu0 %v1971_v12  ;;  %v66_v34 = vld [vmem:[#allocation2 + $0x18] sm:$0xff]  ;;  %v79_v38 = vld [vmem:[#allocation2 + $0x80] sm:$0xff]  ;;  %v65_v41 = vld [vmem:[#allocation2 + $0x10] sm:$0xff] }
  0x44   :  { %1771 = vmatprep.subr.bf16.mxu1 %v1972_v13  ;;  %v82_v36 = vld [vmem:[#allocation2 + $0x98] sm:$0xff]  ;;  %v95_v40 = vpack.c.bf16 %v79_v38, %v63_v37  ;;  %v81_v42 = vld [vmem:[#allocation2 + $0x90] sm:$0xff]  ;;  %1174 = vmatprep.mubr.bf16.mxu0 %v96_v35  ;;  %v1991_v44 = vld [vmem:[#allocation5 + $0x140] sm:$0xff]  }
  0x45   :  { %v98_v39 = vpack.c.bf16 %v82_v36, %v66_v34  ;;  %v97_v43 = vpack.c.bf16 %v81_v42, %v65_v41  ;;  %v1992_v45 = vld [vmem:[#allocation5 + $0x1c0] sm:$0xff]   ;;  %v1995_v48 = vld [vmem:[#allocation5 + $0x148] sm:$0xff]   ;;  %v1999_v52 = vld [vmem:[#allocation5 + $0x150] sm:$0xff]  }
  0x46   :  { %1750 = vmatpush3.bf16.msra.mxu0 %v1973_v14  ;;  %v1993_v46 = vld [vmem:[#allocation5 + $0x100] sm:$0xff]   ;;  %v1996_v49 = vld [vmem:[#allocation5 + $0x1c8] sm:$0xff]   ;;  %v2000_v53 = vld [vmem:[#allocation5 + $0x1d0] sm:$0xff]  }
  0x47   :  { %1772 = vmatpush3.bf16.msra.mxu1 %v1974_v15  ;;  %1751 = vmatprep.subr.bf16.mxu0 %v1975_v16  ;;  %v1994_v47 = vld [vmem:[#allocation5 + $0x180] sm:$0xff]   ;;  %v1997_v50 = vld [vmem:[#allocation5 + $0x108] sm:$0xff]   ;;  %v2001_v54 = vld [vmem:[#allocation5 + $0x110] sm:$0xff]  }
  0x48   :  { %1773 = vmatprep.subr.bf16.mxu1 %v1976_v17  ;;  %1215 = vmatprep.mubr.bf16.mxu1 %v98_v39  ;;  %v1998_v51 = vld [vmem:[#allocation5 + $0x188] sm:$0xff]   ;;  %v2002_v55 = vld [vmem:[#allocation5 + $0x190] sm:$0xff]   ;;  %v2003_v56 = vld [vmem:[#allocation5 + $0x158] sm:$0xff]  }
  0x49   :  { %v2004_v57 = vld [vmem:[#allocation5 + $0x1d8] sm:$0xff]   ;;  %v2007_v60 = vld [vmem:[#allocation5 + $0x160] sm:$0xff]   ;;  %v2011_v0 = vld [vmem:[#allocation5 + $0x168] sm:$0xff]  }
  0x4a   :  { %1752 = vmatpush3.bf16.msra.mxu0 %v1977_v18  ;;  %v2005_v58 = vld [vmem:[#allocation5 + $0x118] sm:$0xff]   ;;  %v2008_v61 = vld [vmem:[#allocation5 + $0x1e0] sm:$0xff]   ;;  %v2012_v1 = vld [vmem:[#allocation5 + $0x1e8] sm:$0xff]  }
  0x4b   :  { %1774 = vmatpush3.bf16.msra.mxu1 %v1978_v19  ;;  %1753 = vmatprep.subr.bf16.mxu0 %v1979_v20  ;;  %v2006_v59 = vld [vmem:[#allocation5 + $0x198] sm:$0xff]   ;;  %v2009_v62 = vld [vmem:[#allocation5 + $0x120] sm:$0xff]   ;;  %v2013_v2 = vld [vmem:[#allocation5 + $0x128] sm:$0xff]  }
  0x4c   :  { %1775 = vmatprep.subr.bf16.mxu1 %v1980_v21  ;;  %v2010_v63 = vld [vmem:[#allocation5 + $0x1a0] sm:$0xff]   ;;  %v2014_v3 = vld [vmem:[#allocation5 + $0x1a8] sm:$0xff]   ;;  %v2015_v4 = vld [vmem:[#allocation5 + $0x170] sm:$0xff]  }
  0x4d   :  { %v2016_v5 = vld [vmem:[#allocation5 + $0x1f0] sm:$0xff]   ;;  %v2019_v8 = vld [vmem:[#allocation5 + $0x178] sm:$0xff]   ;;  %v68_v12 = vld [vmem:[#allocation2 + $0x28] sm:$0xff] }
  0x4e   :  { %1754 = vmatpush3.bf16.msra.mxu0 %v1981_v22  ;;  %v2017_v6 = vld [vmem:[#allocation5 + $0x130] sm:$0xff]   ;;  %v2020_v9 = vld [vmem:[#allocation5 + $0x1f8] sm:$0xff]   ;;  %v84_v13 = vld [vmem:[#allocation2 + $0xa8] sm:$0xff] }
  0x4f   :  { %1776 = vmatpush3.bf16.msra.mxu1 %v1982_v23  ;;  %1755 = vmatprep.subr.bf16.mxu0 %v1983_v24  ;;  %v2018_v7 = vld [vmem:[#allocation5 + $0x1b0] sm:$0xff]   ;;  %v2021_v10 = vld [vmem:[#allocation5 + $0x138] sm:$0xff]   ;;  %v100_v16 = vpack.c.bf16 %v84_v13, %v68_v12  ;;  %v67_v18 = vld [vmem:[#allocation2 + $0x20] sm:$0xff] }
  0x50   :  { %1777 = vmatprep.subr.bf16.mxu1 %v1984_v25  ;;  %v2022_v11 = vld [vmem:[#allocation5 + $0x1b8] sm:$0xff]   ;;  %v83_v19 = vld [vmem:[#allocation2 + $0xa0] sm:$0xff]  ;;  %v69_v20 = vld [vmem:[#allocation2 + $0x30] sm:$0xff] }
  0x51   :  { %v70_v14 = vld [vmem:[#allocation2 + $0x38] sm:$0xff]  ;;  %v99_v21 = vpack.c.bf16 %v83_v19, %v67_v18  ;;  %v85_v22 = vld [vmem:[#allocation2 + $0xb0] sm:$0xff]  ;;  %v2023_v24 = vld [vmem:[#allocation5 + $0x240] sm:$0xff]  }
  0x52   :  { %1756 = vmatpush3.bf16.msra.mxu0 %v1985_v26  ;;  %v86_v15 = vld [vmem:[#allocation2 + $0xb8] sm:$0xff]  ;;  %v101_v23 = vpack.c.bf16 %v85_v22, %v69_v20  ;;  %v2024_v25 = vld [vmem:[#allocation5 + $0x2c0] sm:$0xff]   ;;  %v2031_v32 = vld [vmem:[#allocation5 + $0x250] sm:$0xff]  }
  0x53   :  { %1778 = vmatpush3.bf16.msra.mxu1 %v1986_v27  ;;  %1757 = vmatprep.subr.bf16.mxu0 %v1987_v28  ;;  %v102_v17 = vpack.c.bf16 %v86_v15, %v70_v14  ;;  %v2025_v26 = vld [vmem:[#allocation5 + $0x200] sm:$0xff]   ;;  %v2027_v28 = vld [vmem:[#allocation5 + $0x248] sm:$0xff]   ;;  %v2032_v33 = vld [vmem:[#allocation5 + $0x2d0] sm:$0xff]  }
  0x54   :  { %1779 = vmatprep.subr.bf16.mxu1 %v1988_v29  ;;  %v2026_v27 = vld [vmem:[#allocation5 + $0x280] sm:$0xff]   ;;  %v2028_v29 = vld [vmem:[#allocation5 + $0x2c8] sm:$0xff]   ;;  %v2033_v34 = vld [vmem:[#allocation5 + $0x210] sm:$0xff]  }
  0x55   :  { %v2034_v35 = vld [vmem:[#allocation5 + $0x290] sm:$0xff]   ;;  %v2035_v36 = vld [vmem:[#allocation5 + $0x258] sm:$0xff]   ;;  %v2040_v41 = vld [vmem:[#allocation5 + $0x2e0] sm:$0xff]  }
  0x56   :  { %1758 = vmatpush3.bf16.msra.mxu0 %v1989_v30  ;;  %v2029_v30 = vld [vmem:[#allocation5 + $0x208] sm:$0xff]   ;;  %v2036_v37 = vld [vmem:[#allocation5 + $0x2d8] sm:$0xff]   ;;  %v2041_v42 = vld [vmem:[#allocation5 + $0x220] sm:$0xff]  }
  0x57   :  { %1780 = vmatpush3.bf16.msra.mxu1 %v1990_v31  ;;  %1787 = vmatprep.subr.bf16.mxu0 %v1991_v44  ;;  %v2030_v31 = vld [vmem:[#allocation5 + $0x288] sm:$0xff]   ;;  %v2037_v38 = vld [vmem:[#allocation5 + $0x218] sm:$0xff]   ;;  %v2063_v12 = vld [vmem:[#allocation5 + $0x350] sm:$0xff]  }
  0x58   :  { %1809 = vmatprep.subr.bf16.mxu1 %v1992_v45  ;;  %v2038_v39 = vld [vmem:[#allocation5 + $0x298] sm:$0xff]   ;;  %v2043_v44 = vld [vmem:[#allocation5 + $0x268] sm:$0xff]   ;;  %v2064_v13 = vld [vmem:[#allocation5 + $0x3d0] sm:$0xff]  }
  0x59   :  { %1175 = vmatmul.mubr.bf16.vlgmr.msra.gmra.mrb[0].mxu0 %v95_v40  ;;  %v2039_v40 = vld [vmem:[#allocation5 + $0x260] sm:$0xff]   ;;  %v2044_v45 = vld [vmem:[#allocation5 + $0x2e8] sm:$0xff]   ;;  %v2065_v14 = vld [vmem:[#allocation5 + $0x310] sm:$0xff]  }
  0x5a   :  { %1216 = vmatmul.mubr.bf16.vlgmr.msra.gmra.mrb[0].mxu1 %v97_v43  ;;  %1788 = vmatpush3.bf16.msra.mxu0 %v1993_v46  ;;  %v2042_v43 = vld [vmem:[#allocation5 + $0x2a0] sm:$0xff]   ;;  %v2045_v46 = vld [vmem:[#allocation5 + $0x228] sm:$0xff]   ;;  %v2066_v15 = vld [vmem:[#allocation5 + $0x390] sm:$0xff]  }
  0x5b   :  { %1810 = vmatpush3.bf16.msra.mxu1 %v1994_v47  ;;  %1789 = vmatprep.subr.bf16.mxu0 %v1995_v48  ;;  %v2046_v47 = vld [vmem:[#allocation5 + $0x2a8] sm:$0xff]   ;;  %v2047_v48 = vld [vmem:[#allocation5 + $0x270] sm:$0xff]   ;;  %v2069_v18 = vld [vmem:[#allocation5 + $0x318] sm:$0xff]  }
  0x5c   :  { %1811 = vmatprep.subr.bf16.mxu1 %v1996_v49  ;;  %1256 = vmatprep.mubr.bf16.mxu0 %v100_v16  ;;  %v2048_v49 = vld [vmem:[#allocation5 + $0x2f0] sm:$0xff]   ;;  %v2067_v16 = vld [vmem:[#allocation5 + $0x358] sm:$0xff]   ;;  %v2071_v20 = vld [vmem:[#allocation5 + $0x360] sm:$0xff]  }
  0x5d   :  { %1297 = vmatprep.mubr.bf16.mxu1 %v102_v17  ;;  %v2068_v17 = vld [vmem:[#allocation5 + $0x3d8] sm:$0xff]   ;;  %v2073_v22 = vld [vmem:[#allocation5 + $0x320] sm:$0xff]  }
  0x5e   :  { %1790 = vmatpush3.bf16.msra.mxu0 %v1997_v50  ;;  %v2049_v50 = vld [vmem:[#allocation5 + $0x230] sm:$0xff]   ;;  %v2070_v19 = vld [vmem:[#allocation5 + $0x398] sm:$0xff]  }
  0x5f   :  { %1812 = vmatpush3.bf16.msra.mxu1 %v1998_v51  ;;  %1791 = vmatprep.subr.bf16.mxu0 %v1999_v52  ;;  %v2050_v51 = vld [vmem:[#allocation5 + $0x2b0] sm:$0xff]   ;;  %v2051_v52 = vld [vmem:[#allocation5 + $0x278] sm:$0xff]  }
  0x60   :  { %1813 = vmatprep.subr.bf16.mxu1 %v2000_v53  ;;  %v2052_v53 = vld [vmem:[#allocation5 + $0x2f8] sm:$0xff]  }
  0x62   :  { %1792 = vmatpush3.bf16.msra.mxu0 %v2001_v54  ;;  %v2053_v54 = vld [vmem:[#allocation5 + $0x238] sm:$0xff]  }
  0x63   :  { %1814 = vmatpush3.bf16.msra.mxu1 %v2002_v55  ;;  %1793 = vmatprep.subr.bf16.mxu0 %v2003_v56  ;;  %v2054_v55 = vld [vmem:[#allocation5 + $0x2b8] sm:$0xff]   ;;  %v72_v56 = vld [vmem:[#allocation2 + $0x48] sm:$0xff] }
  0x64   :  { %1815 = vmatprep.subr.bf16.mxu1 %v2004_v57  ;;  %v88_v57 = vld [vmem:[#allocation2 + $0xc8] sm:$0xff] }
  0x66   :  { %1794 = vmatpush3.bf16.msra.mxu0 %v2005_v58  ;;  %v104_v58 = vpack.c.bf16 %v88_v57, %v72_v56  ;;  %v2094_v56 = vld [vmem:[#allocation7 + $0x38] sm:$0xff]  }
  0x67   :  { %1816 = vmatpush3.bf16.msra.mxu1 %v2006_v59  ;;  %1795 = vmatprep.subr.bf16.mxu0 %v2007_v60  ;;  %v74_v59 = vld [vmem:[#allocation2 + $0x58] sm:$0xff] }
  0x68   :  { %1817 = vmatprep.subr.bf16.mxu1 %v2008_v61  ;;  %v90_v60 = vld [vmem:[#allocation2 + $0xd8] sm:$0xff]  ;;  %v71_v61 = vld [vmem:[#allocation2 + $0x40] sm:$0xff] }
  0x6a   :  { %1796 = vmatpush3.bf16.msra.mxu0 %v2009_v62  ;;  %v106_v62 = vpack.c.bf16 %v90_v60, %v74_v59  ;;  %v1605_v59 = vld [vmem:[%s2295_s2] ss:$0 sm:$0xff] }
  0x6b   :  { %1818 = vmatpush3.bf16.msra.mxu1 %v2010_v63  ;;  %1797 = vmatprep.subr.bf16.mxu0 %v2011_v0  ;;  %v87_v63 = vld [vmem:[#allocation2 + $0xc0] sm:$0xff]  ;;  %v73_v0 = vld [vmem:[#allocation2 + $0x50] sm:$0xff] }
  0x6c   :  { %1819 = vmatprep.subr.bf16.mxu1 %v2012_v1  ;;  %v89_v1 = vld [vmem:[#allocation2 + $0xd0] sm:$0xff] }
  0x6e   :  { %1798 = vmatpush3.bf16.msra.mxu0 %v2013_v2  ;;  %v103_v2 = vpack.c.bf16 %v87_v63, %v71_v61 }
  0x6f   :  { %1820 = vmatpush3.bf16.msra.mxu1 %v2014_v3  ;;  %1799 = vmatprep.subr.bf16.mxu0 %v2015_v4  ;;  %v105_v3 = vpack.c.bf16 %v89_v1, %v73_v0  ;;  %v2055_v4 = vld [vmem:[#allocation5 + $0x340] sm:$0xff]  }
  0x70   :  { %1821 = vmatprep.subr.bf16.mxu1 %v2016_v5  ;;  %v2056_v5 = vld [vmem:[#allocation5 + $0x3c0] sm:$0xff]  }
  0x72   :  { %1800 = vmatpush3.bf16.msra.mxu0 %v2017_v6  ;;  %v2057_v6 = vld [vmem:[#allocation5 + $0x300] sm:$0xff]  }
  0x73   :  { %1822 = vmatpush3.bf16.msra.mxu1 %v2018_v7  ;;  %1801 = vmatprep.subr.bf16.mxu0 %v2019_v8  ;;  %v2058_v7 = vld [vmem:[#allocation5 + $0x380] sm:$0xff]   ;;  %v2059_v8 = vld [vmem:[#allocation5 + $0x348] sm:$0xff]  }
  0x74   :  { %1823 = vmatprep.subr.bf16.mxu1 %v2020_v9  ;;  %v2060_v9 = vld [vmem:[#allocation5 + $0x3c8] sm:$0xff]  }
  0x76   :  { %1802 = vmatpush3.bf16.msra.mxu0 %v2021_v10  ;;  %v2061_v10 = vld [vmem:[#allocation5 + $0x308] sm:$0xff]  }
  0x77   :  { %1824 = vmatpush3.bf16.msra.mxu1 %v2022_v11  ;;  %1831 = vmatprep.subr.bf16.mxu0 %v2023_v24  ;;  %v2062_v11 = vld [vmem:[#allocation5 + $0x388] sm:$0xff]  }
  0x78   :  { %1853 = vmatprep.subr.bf16.mxu1 %v2024_v25  ;;  %v2075_v24 = vld [vmem:[#allocation5 + $0x368] sm:$0xff]  }
  0x79   :  { %1257 = vmatmul.mubr.bf16.vlgmr.msra.gmra.mrb[4].mxu0 %v99_v21  ;;  %v2072_v21 = vld [vmem:[#allocation5 + $0x3e0] sm:$0xff]   ;;  %v2076_v25 = vld [vmem:[#allocation5 + $0x3e8] sm:$0xff]  }
  0x7a   :  { %1298 = vmatmul.mubr.bf16.vlgmr.msra.gmra.mrb[4].mxu1 %v101_v23  ;;  %1832 = vmatpush3.bf16.msra.mxu0 %v2025_v26  ;;  %v2074_v23 = vld [vmem:[#allocation5 + $0x3a0] sm:$0xff]   ;;  %v2077_v26 = vld [vmem:[#allocation5 + $0x328] sm:$0xff]  }
  0x7b   :  { %1854 = vmatpush3.bf16.msra.mxu1 %v2026_v27  ;;  %1833 = vmatprep.subr.bf16.mxu0 %v2027_v28  ;;  %v2078_v27 = vld [vmem:[#allocation5 + $0x3a8] sm:$0xff]   ;;  %v2079_v28 = vld [vmem:[#allocation5 + $0x370] sm:$0xff]  }
  0x7c   :  { %1855 = vmatprep.subr.bf16.mxu1 %v2028_v29  ;;  %1338 = vmatprep.mubr.bf16.mxu0 %v104_v58  ;;  %v2080_v29 = vld [vmem:[#allocation5 + $0x3f0] sm:$0xff]  }
  0x7d   :  { %1379 = vmatprep.mubr.bf16.mxu1 %v106_v62 }
  0x7e   :  { %1834 = vmatpush3.bf16.msra.mxu0 %v2029_v30  ;;  %v2081_v30 = vld [vmem:[#allocation5 + $0x330] sm:$0xff]  }
  0x7f   :  { %1856 = vmatpush3.bf16.msra.mxu1 %v2030_v31  ;;  %1835 = vmatprep.subr.bf16.mxu0 %v2031_v32  ;;  %v2082_v31 = vld [vmem:[#allocation5 + $0x3b0] sm:$0xff]   ;;  %v2083_v32 = vld [vmem:[#allocation5 + $0x378] sm:$0xff]  }
  0x80   :  { %1857 = vmatprep.subr.bf16.mxu1 %v2032_v33  ;;  %v2084_v33 = vld [vmem:[#allocation5 + $0x3f8] sm:$0xff]  }
  0x82   :  { %1836 = vmatpush3.bf16.msra.mxu0 %v2033_v34  ;;  %v2085_v34 = vld [vmem:[#allocation5 + $0x338] sm:$0xff]  }
  0x83   :  { %1858 = vmatpush3.bf16.msra.mxu1 %v2034_v35  ;;  %1837 = vmatprep.subr.bf16.mxu0 %v2035_v36  ;;  %v2086_v35 = vld [vmem:[#allocation5 + $0x3b8] sm:$0xff]   ;;  %v76_v36 = vld [vmem:[#allocation2 + $0x68] sm:$0xff] }
  0x84   :  { %1859 = vmatprep.subr.bf16.mxu1 %v2036_v37  ;;  %v92_v37 = vld [vmem:[#allocation2 + $0xe8] sm:$0xff] }
  0x86   :  { %1838 = vmatpush3.bf16.msra.mxu0 %v2037_v38  ;;  %v78_v38 = vld [vmem:[#allocation2 + $0x78] sm:$0xff] }
  0x87   :  { %1860 = vmatpush3.bf16.msra.mxu1 %v2038_v39  ;;  %1839 = vmatprep.subr.bf16.mxu0 %v2039_v40  ;;  %v108_v39 = vpack.c.bf16 %v92_v37, %v76_v36  ;;  %v94_v40 = vld [vmem:[#allocation2 + $0xf8] sm:$0xff] }
  0x88   :  { %1861 = vmatprep.subr.bf16.mxu1 %v2040_v41  ;;  %v75_v41 = vld [vmem:[#allocation2 + $0x60] sm:$0xff] }
  0x8a   :  { %1840 = vmatpush3.bf16.msra.mxu0 %v2041_v42  ;;  %v91_v42 = vld [vmem:[#allocation2 + $0xe0] sm:$0xff] }
  0x8b   :  { %1862 = vmatpush3.bf16.msra.mxu1 %v2042_v43  ;;  %1841 = vmatprep.subr.bf16.mxu0 %v2043_v44  ;;  %v110_v43 = vpack.c.bf16 %v94_v40, %v78_v38  ;;  %v107_v44 = vpack.c.bf16 %v91_v42, %v75_v41 }
  0x8c   :  { %1863 = vmatprep.subr.bf16.mxu1 %v2044_v45  ;;  %v77_v45 = vld [vmem:[#allocation2 + $0x70] sm:$0xff] }
  0x8e   :  { %1842 = vmatpush3.bf16.msra.mxu0 %v2045_v46  ;;  %v93_v46 = vld [vmem:[#allocation2 + $0xf0] sm:$0xff] }
  0x8f   :  { %1864 = vmatpush3.bf16.msra.mxu1 %v2046_v47  ;;  %1843 = vmatprep.subr.bf16.mxu0 %v2047_v48  ;;  %v109_v47 = vpack.c.bf16 %v93_v46, %v77_v45  ;;  %v2087_v48 = vld [vmem:[#allocation7] sm:$0xff]  }
  0x90   :  { %1865 = vmatprep.subr.bf16.mxu1 %v2048_v49  ;;  %v2196_v49 = vmov 0.0  }
  0x92   :  { %1844 = vmatpush3.bf16.msra.mxu0 %v2049_v50  ;;  %v2088_v50 = vld [vmem:[#allocation7 + $0x8] sm:$0xff]  }
  0x93   :  { %1866 = vmatpush3.bf16.msra.mxu1 %v2050_v51  ;;  %1845 = vmatprep.subr.bf16.mxu0 %v2051_v52  ;;  %v2089_v51 = vld [vmem:[#allocation7 + $0x10] sm:$0xff]   ;;  %v2090_v52 = vld [vmem:[#allocation7 + $0x18] sm:$0xff]  }
  0x94   :  { %1867 = vmatprep.subr.bf16.mxu1 %v2052_v53  ;;  %v2091_v53 = vld [vmem:[#allocation7 + $0x20] sm:$0xff]  }
  0x96   :  { %1846 = vmatpush3.bf16.msra.mxu0 %v2053_v54  ;;  %v2092_v54 = vld [vmem:[#allocation7 + $0x28] sm:$0xff]  }
  0x97   :  { %1868 = vmatpush3.bf16.msra.mxu1 %v2054_v55  ;;  %1875 = vmatprep.subr.bf16.mxu0 %v2055_v4  ;;  %v2093_v55 = vld [vmem:[#allocation7 + $0x30] sm:$0xff]  }
  0x98   :  { %1897 = vmatprep.subr.bf16.mxu1 %v2056_v5 }
  0x99   :  { %1339 = vmatmul.mubr.bf16.vlgmr.msra.gmra.mrb[8].mxu0 %v103_v2 }
  0x9a   :  { %1380 = vmatmul.mubr.bf16.vlgmr.msra.gmra.mrb[8].mxu1 %v105_v3  ;;  %1876 = vmatpush3.bf16.msra.mxu0 %v2057_v6 }
  0x9b   :  { %1898 = vmatpush3.bf16.msra.mxu1 %v2058_v7  ;;  %1877 = vmatprep.subr.bf16.mxu0 %v2059_v8 }
  0x9c   :  { %1899 = vmatprep.subr.bf16.mxu1 %v2060_v9  ;;  %1420 = vmatprep.mubr.bf16.mxu0 %v108_v39 }
  0x9d   :  { %1461 = vmatprep.mubr.bf16.mxu1 %v110_v43 }
  0x9e   :  { %1878 = vmatpush3.bf16.msra.mxu0 %v2061_v10 }
  0x9f   :  { %1900 = vmatpush3.bf16.msra.mxu1 %v2062_v11  ;;  %1879 = vmatprep.subr.bf16.mxu0 %v2063_v12 }
  0xa0   :  { %1901 = vmatprep.subr.bf16.mxu1 %v2064_v13 }
  0xa2   :  { %1880 = vmatpush3.bf16.msra.mxu0 %v2065_v14 }
  0xa3   :  { %1902 = vmatpush3.bf16.msra.mxu1 %v2066_v15  ;;  %1881 = vmatprep.subr.bf16.mxu0 %v2067_v16 }
  0xa4   :  { %1903 = vmatprep.subr.bf16.mxu1 %v2068_v17 }
  0xa6   :  { %1882 = vmatpush3.bf16.msra.mxu0 %v2069_v18 }
  0xa7   :  { %1904 = vmatpush3.bf16.msra.mxu1 %v2070_v19  ;;  %1883 = vmatprep.subr.bf16.mxu0 %v2071_v20 }
  0xa8   :  { %1905 = vmatprep.subr.bf16.mxu1 %v2072_v21 }
  0xaa   :  { %1884 = vmatpush3.bf16.msra.mxu0 %v2073_v22 }
  0xab   :  { %1906 = vmatpush3.bf16.msra.mxu1 %v2074_v23  ;;  %1885 = vmatprep.subr.bf16.mxu0 %v2075_v24 }
  0xac   :  { %1907 = vmatprep.subr.bf16.mxu1 %v2076_v25 }
  0xae   :  { %1886 = vmatpush3.bf16.msra.mxu0 %v2077_v26 }
  0xaf   :  { %1908 = vmatpush3.bf16.msra.mxu1 %v2078_v27  ;;  %1887 = vmatprep.subr.bf16.mxu0 %v2079_v28 }
  0xb0   :  { %1909 = vmatprep.subr.bf16.mxu1 %v2080_v29 }
  0xb2   :  { %1888 = vmatpush3.bf16.msra.mxu0 %v2081_v30 }
  0xb3   :  { %1910 = vmatpush3.bf16.msra.mxu1 %v2082_v31  ;;  %1889 = vmatprep.subr.bf16.mxu0 %v2083_v32 }
  0xb4   :  { %1911 = vmatprep.subr.bf16.mxu1 %v2084_v33 }
  0xb6   :  { %1890 = vmatpush3.bf16.msra.mxu0 %v2085_v34 }
  0xb7   :  { %1912 = vmatpush3.bf16.msra.mxu1 %v2086_v35  ;;  %1928 = vmatprep.subr.bf16.mxu0 %v2196_v49 }
  0xb9   :  { %1421 = vmatmul.mubr.bf16.vlgmr.msra.gmra.mrb[12].mxu0 %v107_v44 }
  0xba   :  { %1462 = vmatmul.mubr.bf16.vlgmr.msra.gmra.mrb[12].mxu1 %v109_v47  ;;  %1929 = vmatpush3.bf16.msra.mxu0 %v2087_v48 }
  0xbb   :  { %1930 = vmatprep.subr.bf16.mxu0 %v2196_v49  ;;  %1944 = vmatprep.mubr.msk.bf16.mxu0 %vm2197_vm0, %v2196_v49 }
  0xbe   :  { %1931 = vmatpush3.bf16.msra.mxu0 %v2088_v50 }
  0xbf   :  { %1932 = vmatprep.subr.bf16.mxu0 %v2196_v49 }
  0xc2   :  { %1933 = vmatpush3.bf16.msra.mxu0 %v2089_v51 }
  0xc3   :  { %1934 = vmatprep.subr.bf16.mxu0 %v2196_v49 }
  0xc6   :  { %1935 = vmatpush3.bf16.msra.mxu0 %v2090_v52 }
  0xc7   :  { %1936 = vmatprep.subr.bf16.mxu0 %v2196_v49 }
  0xca   :  { %1937 = vmatpush3.bf16.msra.mxu0 %v2091_v53 }
  0xcb   :  { %1938 = vmatprep.subr.bf16.mxu0 %v2196_v49 }
  0xce   :  { %1939 = vmatpush3.bf16.msra.mxu0 %v2092_v54 }
  0xcf   :  { %1940 = vmatprep.subr.bf16.mxu0 %v2196_v49 }
  0xd2   :  { %1941 = vmatpush3.bf16.msra.mxu0 %v2093_v55 }
  0xd3   :  { %1942 = vmatprep.subr.bf16.mxu0 %v2196_v49 }
  0xd6   :  { %1943 = vmatpush3.bf16.msra.mxu0 %v2094_v56 }
 0x12c   :  { %v1759_v57 = vpop.f32.mrb[0].mxu0 }
 0x12d   :  { %v1781_v58 = vpop.f32.mrb[0].mxu1  ;;  %v1760_v60 = vpop.f32.mrb[1].mxu0 }
 0x12e   :  { %v1761_v61 = vadd.f32 %v1760_v60, %v1759_v57  ;;  %v1782_v62 = vpop.f32.mrb[1].mxu1  ;;  %v1762_v63 = vpop.f32.mrb[2].mxu0 }
 0x12f   :  { %v1783_v0 = vadd.f32 %v1782_v62, %v1781_v58  ;;  %v1784_v1 = vpop.f32.mrb[2].mxu1  ;;  %v1763_v2 = vpop.f32.mrb[3].mxu0 }
 0x130   :  { %v1177_v3 = vadd.f32 %v1761_v61, %v1605_v59  ;;  %v1764_v4 = vadd.f32 %v1763_v2, %v1762_v63  ;;  %v1785_v5 = vpop.f32.mrb[3].mxu1  ;;  %v1734_v61 = vld [vmem:[%s2297_s4] ss:$0 sm:$0xff] }
 0x131   :  { %v1786_v6 = vadd.f32 %v1785_v5, %v1784_v1 }
 0x132   :  { %v1218_v7 = vadd.f32 %v1783_v0, %v1177_v3  ;;  %v1180_v8 = vadd.f32 %v1764_v4, %v1605_v59 }
 0x134   :  { %v1221_v9 = vadd.f32 %v1786_v6, %v1180_v8 }
 0x14c   :  { %v1803_v10 = vpop.f32.mrb[4].mxu0 }
 0x14d   :  { %v1825_v11 = vpop.f32.mrb[4].mxu1  ;;  %v1804_v12 = vpop.f32.mrb[5].mxu0 }
 0x14e   :  { %v1805_v13 = vadd.f32 %v1804_v12, %v1803_v10  ;;  %v1826_v14 = vpop.f32.mrb[5].mxu1  ;;  %v1806_v15 = vpop.f32.mrb[6].mxu0 }
 0x14f   :  { %v1827_v16 = vadd.f32 %v1826_v14, %v1825_v11  ;;  %v1828_v17 = vpop.f32.mrb[6].mxu1  ;;  %v1807_v18 = vpop.f32.mrb[7].mxu0 }
 0x150   :  { %v1259_v19 = vadd.f32 %v1805_v13, %v1218_v7  ;;  %v1808_v20 = vadd.f32 %v1807_v18, %v1806_v15  ;;  %v1829_v21 = vpop.f32.mrb[7].mxu1 }
 0x151   :  { %v1830_v22 = vadd.f32 %v1829_v21, %v1828_v17 }
 0x152   :  { %v1300_v23 = vadd.f32 %v1827_v16, %v1259_v19  ;;  %v1262_v24 = vadd.f32 %v1808_v20, %v1221_v9 }
 0x154   :  { %v1303_v25 = vadd.f32 %v1830_v22, %v1262_v24 }
 0x16c   :  { %v1847_v26 = vpop.f32.mrb[8].mxu0 }
 0x16d   :  { %v1869_v27 = vpop.f32.mrb[8].mxu1  ;;  %v1848_v28 = vpop.f32.mrb[9].mxu0 }
 0x16e   :  { %v1870_v29 = vpop.f32.mrb[9].mxu1  ;;  %v1849_v30 = vadd.f32 %v1848_v28, %v1847_v26  ;;  %v1850_v32 = vpop.f32.mrb[10].mxu0 }
 0x16f   :  { %v1871_v31 = vadd.f32 %v1870_v29, %v1869_v27  ;;  %v1872_v33 = vpop.f32.mrb[10].mxu1  ;;  %v1851_v34 = vpop.f32.mrb[11].mxu0 }
 0x170   :  { %v1873_v35 = vpop.f32.mrb[11].mxu1  ;;  %v1341_v36 = vadd.f32 %v1849_v30, %v1300_v23  ;;  %v1852_v37 = vadd.f32 %v1851_v34, %v1850_v32 }
 0x171   :  { %v1874_v38 = vadd.f32 %v1873_v35, %v1872_v33 }
 0x172   :  { %v1382_v39 = vadd.f32 %v1871_v31, %v1341_v36  ;;  %v1344_v40 = vadd.f32 %v1852_v37, %v1303_v25 }
 0x174   :  { %v1385_v41 = vadd.f32 %v1874_v38, %v1344_v40 }
 0x18c   :  { %v1891_v42 = vpop.f32.mrb[12].mxu0 }
 0x18d   :  { %v1913_v43 = vpop.f32.mrb[12].mxu1  ;;  %v1892_v44 = vpop.f32.mrb[13].mxu0 }
 0x18e   :  { %v1893_v45 = vadd.f32 %v1892_v44, %v1891_v42  ;;  %v1914_v46 = vpop.f32.mrb[13].mxu1  ;;  %v1894_v47 = vpop.f32.mrb[14].mxu0 }
 0x18f   :  { %v1915_v48 = vadd.f32 %v1914_v46, %v1913_v43  ;;  %v1916_v49 = vpop.f32.mrb[14].mxu1  ;;  %v1895_v50 = vpop.f32.mrb[15].mxu0 }
 0x190   :  { %v1423_v51 = vadd.f32 %v1893_v45, %v1382_v39  ;;  %v1896_v52 = vadd.f32 %v1895_v50, %v1894_v47  ;;  %v1917_v53 = vpop.f32.mrb[15].mxu1 }
 0x191   :  { %v1918_v54 = vadd.f32 %v1917_v53, %v1916_v49 }
 0x192   :  { %v1464_v55 = vadd.f32 %v1915_v48, %v1423_v51  ;;  %v1426_v56 = vadd.f32 %v1896_v52, %v1385_v41 }
 0x194   :  { %v1467_v57 = vadd.f32 %v1918_v54, %v1426_v56  ;;  %v1470_v58 = vmax.f32 %v1464_v55, 0.0 }
 0x196   :  { %v1471_v59 = vmax.f32 %v1467_v57, 0.0 }
 0x198   :  { %v1472_v60 = vpack.c.bf16 %v1471_v59, %v1470_v58 }
 0x19a   :  { %1945 = vmatmul.mubr.bf16.vlgmr.msra.gmra.mrb[16].mxu0 %v1472_v60 }
 0x26d   :  { %v1578_v62 = vpop.f32.mrb[16].mxu0 }
 0x26e   :  { %v1579_v63 = vadd.f32 %v1734_v61, %v1578_v62  ;;  %v1946_v0 = vpop.f32.mrb[17].mxu0 }
 0x26f   :  { %v1581_v1 = vpop.f32.mrb[18].mxu0 }
 0x270   :  { %1585 = vst [vmem:[#allocation8] sm:$0xff] %v1579_v63  ;;  %v1582_v2 = vadd.f32 %v1734_v61, %v1581_v1  ;;  %v1947_v3 = vpop.f32.mrb[19].mxu0 }
 0x272   :  { %1586 = vst [vmem:[#allocation8 + $0x8] sm:$0xff] %v1582_v2 }
 0x273   :  { %2172 = shalt.err (!%p2169_p0)
}
 0x274   :  { %s2173_s12 = scalar_lea.hbm %s2298_s5, 256 }
 0x275   :  { %p2174_p1 = scmp.ne.s32.totalorder %s2298_s5, %s2173_s12  ;;  %p2177_p2 = scmp.lt.u32.totalorder %s2173_s12, %s2298_s5 }
 0x277   :  { %p2179_p3 = pnand %p2177_p2, %p2174_p1 }
 0x279   :  { %2182 = shalt.err (!%p2179_p3)
}
 0x27a   :  { %s2199_s1 = smov 8  }
 0x27b   :  { %1598 = dma.vmem_to_hbm [thread:$0]  %s1593_s9, 256, %s2298_s5, [#allocation4], %s2194_s17, %s2194_s17, %s2199_s1  }
 0x27c   :  { %2187 = dma.done.wait [#allocation4], 256  }
 0x27d   :  { %2188 = vsyncadd [#allocation4], 4294967040 }
 0x27e   :  { %1602 = vsyncpa [#allocation3], 1 }
 0x27f   :  { %1603 = vsyncpa [#allocation6], 1 }
 0x280   :  { %1604 = vsyncpa [#allocation4], 1 }

// kernel: tpu_custom_call.1
= control target key start
LH: loop header
LB: loop body
LE: loop exit
PB: predicated region body
PF: predicated region fallthrough
CT: control target
= control target key end

     0   :  { %10 = vsyncpa [#allocation3], 0  ;;  %s2293_s0 = inlined_call_operand.hbm [shape: f32[16,2048], index: 0, kind: input, shape index: {}]   ;;  %s2294_s1 = inlined_call_operand.hbm [shape: bf16[2048,128], index: 1, kind: input, shape index: {}]   ;;  %s2295_s2 = inlined_call_operand.vmem [shape: f32[1,128], index: 2, kind: input, shape index: {}]   ;;  %s2296_s3 = inlined_call_operand.hbm [shape: bf16[128,128], index: 3, kind: input, shape index: {}]   ;;  %s2297_s4 = inlined_call_operand.vmem [shape: f32[1,128], index: 4, kind: input, shape index: {}]   ;;  %s2298_s5 = inlined_call_operand.hbm [shape: f32[16,128], index: 5, kind: output, shape index: {}]  }
   0x1   :  { %11 = vsyncpa [#allocation6], 0 }
   0x2   :  { %12 = vsyncpa [#allocation4], 0  ;;  %s2189_s18 = smov [#allocation5]   ;;  %s2095_s22 = scalar_lea.hbm %s2294_s1, 16384 }
   0x3   :  { %s30_s19 = sshll.u32 %s2189_s18, 4  ;;  %p2096_p0 = scmp.ne.s32.totalorder %s2294_s1, %s2095_s22  ;;  %s31_s19 = int_to_ptr.vmem [resolvable:$true] %s30_s19 }
   0x4   :  { %p2099_p1 = scmp.lt.u32.totalorder %s2095_s22, %s2294_s1 }
   0x6   :  { %p2101_p2 = pnand %p2099_p1, %p2096_p0 }
   0x8   :  { %2104 = shalt.err (!%p2101_p2)
}
   0x9   :  { %s2105_s27 = scalar_lea.vmem %s31_s19, 16384  ;;  %p2110_p4 = scmp.lt.s32.totalorder %s31_s19, %s31_s19 }
   0xa   :  { %p2106_p3 = scmp.ne.s32.totalorder %s31_s19, %s2105_s27  ;;  %p2111_p5 = scmp.lt.s32.totalorder %s2105_s27, %s2105_s27 }
   0xc   :  { %p2112_p6 = por %p2111_p5, %p2110_p4 }
   0xe   :  { %p2113_p7 = pnand %p2112_p6, %p2106_p3 }
  0x10   :  { %2116 = shalt.err (!%p2113_p7)
}
  0x11   :  { %s2190_s28 = smov 64   ;;  %s2191_s29 = smov 4  }
  0x12   :  { %36 = dma.hbm_to_vmem [thread:$0]  %s2294_s1, 16384, %s31_s19, [#allocation6], %s2190_s28, %s2190_s28, %s2191_s29  }
  0x13   :  { %s2192_s7 = smov [#allocation2]   ;;  %s2117_s11 = scalar_lea.hbm %s2293_s0, 4096 }
  0x14   :  { %s18_s8 = sshll.u32 %s2192_s7, 4  ;;  %p2118_p8 = scmp.ne.s32.totalorder %s2293_s0, %s2117_s11  ;;  %s19_s8 = int_to_ptr.vmem [resolvable:$true] %s18_s8 }
  0x15   :  { %p2121_p9 = scmp.lt.u32.totalorder %s2117_s11, %s2293_s0 }
  0x17   :  { %p2123_p10 = pnand %p2121_p9, %p2118_p8 }
  0x19   :  { %2126 = shalt.err (!%p2123_p10)
}
  0x1a   :  { %s2127_s16 = scalar_lea.vmem %s19_s8, 4096  ;;  %p2132_p12 = scmp.lt.s32.totalorder %s19_s8, %s19_s8 }
  0x1b   :  { %p2128_p11 = scmp.ne.s32.totalorder %s19_s8, %s2127_s16  ;;  %p2133_p13 = scmp.lt.s32.totalorder %s2127_s16, %s2127_s16 }
  0x1d   :  { %p2134_p0 = por %p2133_p13, %p2132_p12 }
  0x1f   :  { %p2135_p1 = pnand %p2134_p0, %p2128_p11 }
  0x21   :  { %2138 = shalt.err (!%p2135_p1)
}
  0x22   :  { %s2193_s1 = smov 2048   ;;  %s2194_s17 = smov 128  }
  0x23   :  { %24 = dma.hbm_to_vmem [thread:$0]  %s2293_s0, 4096, %s19_s8, [#allocation3], %s2193_s1, %s2193_s1, %s2194_s17  }
  0x24   :  { %s2195_s20 = smov [#allocation7]   ;;  %s2139_s24 = scalar_lea.hbm %s2296_s3, 1024 }
  0x25   :  { %s44_s21 = sshll.u32 %s2195_s20, 4  ;;  %p2140_p2 = scmp.ne.s32.totalorder %s2296_s3, %s2139_s24  ;;  %s45_s21 = int_to_ptr.vmem [resolvable:$true] %s44_s21 }
  0x26   :  { %p2143_p3 = scmp.lt.u32.totalorder %s2139_s24, %s2296_s3 }
  0x28   :  { %p2145_p4 = pnand %p2143_p3, %p2140_p2 }
  0x2a   :  { %2148 = shalt.err (!%p2145_p4)
}
  0x2b   :  { %s2149_s6 = scalar_lea.vmem %s45_s21, 1024  ;;  %p2154_p6 = scmp.lt.s32.totalorder %s45_s21, %s45_s21 }
  0x2c   :  { %p2150_p5 = scmp.ne.s32.totalorder %s45_s21, %s2149_s6  ;;  %p2155_p7 = scmp.lt.s32.totalorder %s2149_s6, %s2149_s6 }
  0x2e   :  { %p2156_p8 = por %p2155_p7, %p2154_p6 }
  0x30   :  { %p2157_p9 = pnand %p2156_p8, %p2150_p5 }
  0x32   :  { %2160 = shalt.err (!%p2157_p9)
}
  0x33   :  { %50 = dma.hbm_to_vmem [thread:$0]  %s2296_s3, 1024, %s45_s21, [#allocation6], %s2190_s28, %s2190_s28, %s2191_s29  }
  0x34   :  { %2183 = dma.done.wait [#allocation3], 4096  }
  0x35   :  { %2184 = vsyncadd [#allocation3], 4294963200 }
  0x36   :  { %2185 = dma.done.wait [#allocation6], 17408  }
  0x37   :  { %2186 = vsyncadd [#allocation6], 4294949888  ;;  %v1959_v0 = vld [vmem:[#allocation5 + $0x40] sm:$0xff]   ;;  %v1963_v4 = vld [vmem:[#allocation5 + $0x48] sm:$0xff]   ;;  %vm2197_vm0 = vmmov 0   ;;  %s2198_s8 = smov [#allocation8]  }
  0x38   :  { %v1960_v1 = vld [vmem:[#allocation5 + $0xc0] sm:$0xff]   ;;  %1743 = vmatprep.subr.bf16.mxu0 %v1959_v0  ;;  %v1964_v5 = vld [vmem:[#allocation5 + $0xc8] sm:$0xff]   ;;  %v1967_v8 = vld [vmem:[#allocation5 + $0x50] sm:$0xff]   ;;  %s1592_s9 = sshll.u32 %s2198_s8, 4  ;;  %s1593_s9 = int_to_ptr.vmem [resolvable:$true] %s1592_s9 }
  0x39   :  { %v1961_v2 = vld [vmem:[#allocation5] sm:$0xff]   ;;  %1765 = vmatprep.subr.bf16.mxu1 %v1960_v1  ;;  %v1965_v6 = vld [vmem:[#allocation5 + $0x8] sm:$0xff]   ;;  %v1968_v9 = vld [vmem:[#allocation5 + $0xd0] sm:$0xff]   ;;  %s2161_s10 = scalar_lea.vmem %s1593_s9, 256  ;;  %p2166_p11 = scmp.lt.s32.totalorder %s1593_s9, %s1593_s9 }
  0x3a   :  { %v1962_v3 = vld [vmem:[#allocation5 + $0x80] sm:$0xff]   ;;  %1744 = vmatpush3.bf16.msra.mxu0 %v1961_v2  ;;  %v1966_v7 = vld [vmem:[#allocation5 + $0x88] sm:$0xff]   ;;  %v1969_v10 = vld [vmem:[#allocation5 + $0x10] sm:$0xff]   ;;  %p2162_p10 = scmp.ne.s32.totalorder %s1593_s9, %s2161_s10  ;;  %p2167_p12 = scmp.lt.s32.totalorder %s2161_s10, %s2161_s10 }
  0x3b   :  { %1766 = vmatpush3.bf16.msra.mxu1 %v1962_v3  ;;  %1745 = vmatprep.subr.bf16.mxu0 %v1963_v4  ;;  %v1970_v11 = vld [vmem:[#allocation5 + $0x90] sm:$0xff]   ;;  %v1971_v12 = vld [vmem:[#allocation5 + $0x58] sm:$0xff]   ;;  %v1975_v16 = vld [vmem:[#allocation5 + $0x60] sm:$0xff]  }
  0x3c   :  { %1767 = vmatprep.subr.bf16.mxu1 %v1964_v5  ;;  %v1972_v13 = vld [vmem:[#allocation5 + $0xd8] sm:$0xff]   ;;  %v1976_v17 = vld [vmem:[#allocation5 + $0xe0] sm:$0xff]   ;;  %v1979_v20 = vld [vmem:[#allocation5 + $0x68] sm:$0xff]   ;;  %p2168_p13 = por %p2167_p12, %p2166_p11 }
  0x3d   :  { %v1973_v14 = vld [vmem:[#allocation5 + $0x18] sm:$0xff]   ;;  %v1977_v18 = vld [vmem:[#allocation5 + $0x20] sm:$0xff]   ;;  %v1980_v21 = vld [vmem:[#allocation5 + $0xe8] sm:$0xff]  }
  0x3e   :  { %1746 = vmatpush3.bf16.msra.mxu0 %v1965_v6  ;;  %v1974_v15 = vld [vmem:[#allocation5 + $0x98] sm:$0xff]   ;;  %v1978_v19 = vld [vmem:[#allocation5 + $0xa0] sm:$0xff]   ;;  %v1981_v22 = vld [vmem:[#allocation5 + $0x28] sm:$0xff]   ;;  %p2169_p0 = pnand %p2168_p13, %p2162_p10 }
  0x3f   :  { %1768 = vmatpush3.bf16.msra.mxu1 %v1966_v7  ;;  %1747 = vmatprep.subr.bf16.mxu0 %v1967_v8  ;;  %v1982_v23 = vld [vmem:[#allocation5 + $0xa8] sm:$0xff]   ;;  %v1983_v24 = vld [vmem:[#allocation5 + $0x70] sm:$0xff]   ;;  %v1987_v28 = vld [vmem:[#allocation5 + $0x78] sm:$0xff]  }
  0x40   :  { %1769 = vmatprep.subr.bf16.mxu1 %v1968_v9  ;;  %v1984_v25 = vld [vmem:[#allocation5 + $0xf0] sm:$0xff]   ;;  %v1988_v29 = vld [vmem:[#allocation5 + $0xf8] sm:$0xff]   ;;  %v64_v32 = vld [vmem:[#allocation2 + $0x8] sm:$0xff] }
  0x41   :  { %v1985_v26 = vld [vmem:[#allocation5 + $0x30] sm:$0xff]   ;;  %v1989_v30 = vld [vmem:[#allocation5 + $0x38] sm:$0xff]   ;;  %v80_v33 = vld [vmem:[#allocation2 + $0x88] sm:$0xff] }
  0x42   :  { %1748 = vmatpush3.bf16.msra.mxu0 %v1969_v10  ;;  %v1986_v27 = vld [vmem:[#allocation5 + $0xb0] sm:$0xff]   ;;  %v1990_v31 = vld [vmem:[#allocation5 + $0xb8] sm:$0xff]   ;;  %v96_v35 = vpack.c.bf16 %v80_v33, %v64_v32  ;;  %v63_v37 = vld [vmem:[#allocation2] sm:$0xff] }
  0x43   :  { %1770 = vmatpush3.bf16.msra.mxu1 %v1970_v11  ;;  %1749 = vmatprep.subr.bf16.mxu0 %v1971_v12  ;;  %v66_v34 = vld [vmem:[#allocation2 + $0x18] sm:$0xff]  ;;  %v79_v38 = vld [vmem:[#allocation2 + $0x80] sm:$0xff]  ;;  %v65_v41 = vld [vmem:[#allocation2 + $0x10] sm:$0xff] }
  0x44   :  { %1771 = vmatprep.subr.bf16.mxu1 %v1972_v13  ;;  %v82_v36 = vld [vmem:[#allocation2 + $0x98] sm:$0xff]  ;;  %v95_v40 = vpack.c.bf16 %v79_v38, %v63_v37  ;;  %v81_v42 = vld [vmem:[#allocation2 + $0x90] sm:$0xff]  ;;  %1174 = vmatprep.mubr.bf16.mxu0 %v96_v35  ;;  %v1991_v44 = vld [vmem:[#allocation5 + $0x140] sm:$0xff]  }
  0x45   :  { %v98_v39 = vpack.c.bf16 %v82_v36, %v66_v34  ;;  %v97_v43 = vpack.c.bf16 %v81_v42, %v65_v41  ;;  %v1992_v45 = vld [vmem:[#allocation5 + $0x1c0] sm:$0xff]   ;;  %v1995_v48 = vld [vmem:[#allocation5 + $0x148] sm:$0xff]   ;;  %v1999_v52 = vld [vmem:[#allocation5 + $0x150] sm:$0xff]  }
  0x46   :  { %1750 = vmatpush3.bf16.msra.mxu0 %v1973_v14  ;;  %v1993_v46 = vld [vmem:[#allocation5 + $0x100] sm:$0xff]   ;;  %v1996_v49 = vld [vmem:[#allocation5 + $0x1c8] sm:$0xff]   ;;  %v2000_v53 = vld [vmem:[#allocation5 + $0x1d0] sm:$0xff]  }
  0x47   :  { %1772 = vmatpush3.bf16.msra.mxu1 %v1974_v15  ;;  %1751 = vmatprep.subr.bf16.mxu0 %v1975_v16  ;;  %v1994_v47 = vld [vmem:[#allocation5 + $0x180] sm:$0xff]   ;;  %v1997_v50 = vld [vmem:[#allocation5 + $0x108] sm:$0xff]   ;;  %v2001_v54 = vld [vmem:[#allocation5 + $0x110] sm:$0xff]  }
  0x48   :  { %1773 = vmatprep.subr.bf16.mxu1 %v1976_v17  ;;  %1215 = vmatprep.mubr.bf16.mxu1 %v98_v39  ;;  %v1998_v51 = vld [vmem:[#allocation5 + $0x188] sm:$0xff]   ;;  %v2002_v55 = vld [vmem:[#allocation5 + $0x190] sm:$0xff]   ;;  %v2003_v56 = vld [vmem:[#allocation5 + $0x158] sm:$0xff]  }
  0x49   :  { %v2004_v57 = vld [vmem:[#allocation5 + $0x1d8] sm:$0xff]   ;;  %v2007_v60 = vld [vmem:[#allocation5 + $0x160] sm:$0xff]   ;;  %v2011_v0 = vld [vmem:[#allocation5 + $0x168] sm:$0xff]  }
  0x4a   :  { %1752 = vmatpush3.bf16.msra.mxu0 %v1977_v18  ;;  %v2005_v58 = vld [vmem:[#allocation5 + $0x118] sm:$0xff]   ;;  %v2008_v61 = vld [vmem:[#allocation5 + $0x1e0] sm:$0xff]   ;;  %v2012_v1 = vld [vmem:[#allocation5 + $0x1e8] sm:$0xff]  }
  0x4b   :  { %1774 = vmatpush3.bf16.msra.mxu1 %v1978_v19  ;;  %1753 = vmatprep.subr.bf16.mxu0 %v1979_v20  ;;  %v2006_v59 = vld [vmem:[#allocation5 + $0x198] sm:$0xff]   ;;  %v2009_v62 = vld [vmem:[#allocation5 + $0x120] sm:$0xff]   ;;  %v2013_v2 = vld [vmem:[#allocation5 + $0x128] sm:$0xff]  }
  0x4c   :  { %1775 = vmatprep.subr.bf16.mxu1 %v1980_v21  ;;  %v2010_v63 = vld [vmem:[#allocation5 + $0x1a0] sm:$0xff]   ;;  %v2014_v3 = vld [vmem:[#allocation5 + $0x1a8] sm:$0xff]   ;;  %v2015_v4 = vld [vmem:[#allocation5 + $0x170] sm:$0xff]  }
  0x4d   :  { %v2016_v5 = vld [vmem:[#allocation5 + $0x1f0] sm:$0xff]   ;;  %v2019_v8 = vld [vmem:[#allocation5 + $0x178] sm:$0xff]   ;;  %v68_v12 = vld [vmem:[#allocation2 + $0x28] sm:$0xff] }
  0x4e   :  { %1754 = vmatpush3.bf16.msra.mxu0 %v1981_v22  ;;  %v2017_v6 = vld [vmem:[#allocation5 + $0x130] sm:$0xff]   ;;  %v2020_v9 = vld [vmem:[#allocation5 + $0x1f8] sm:$0xff]   ;;  %v84_v13 = vld [vmem:[#allocation2 + $0xa8] sm:$0xff] }
  0x4f   :  { %1776 = vmatpush3.bf16.msra.mxu1 %v1982_v23  ;;  %1755 = vmatprep.subr.bf16.mxu0 %v1983_v24  ;;  %v2018_v7 = vld [vmem:[#allocation5 + $0x1b0] sm:$0xff]   ;;  %v2021_v10 = vld [vmem:[#allocation5 + $0x138] sm:$0xff]   ;;  %v100_v16 = vpack.c.bf16 %v84_v13, %v68_v12  ;;  %v67_v18 = vld [vmem:[#allocation2 + $0x20] sm:$0xff] }
  0x50   :  { %1777 = vmatprep.subr.bf16.mxu1 %v1984_v25  ;;  %v2022_v11 = vld [vmem:[#allocation5 + $0x1b8] sm:$0xff]   ;;  %v83_v19 = vld [vmem:[#allocation2 + $0xa0] sm:$0xff]  ;;  %v69_v20 = vld [vmem:[#allocation2 + $0x30] sm:$0xff] }
  0x51   :  { %v70_v14 = vld [vmem:[#allocation2 + $0x38] sm:$0xff]  ;;  %v99_v21 = vpack.c.bf16 %v83_v19, %v67_v18  ;;  %v85_v22 = vld [vmem:[#allocation2 + $0xb0] sm:$0xff]  ;;  %v2023_v24 = vld [vmem:[#allocation5 + $0x240] sm:$0xff]  }
  0x52   :  { %1756 = vmatpush3.bf16.msra.mxu0 %v1985_v26  ;;  %v86_v15 = vld [vmem:[#allocation2 + $0xb8] sm:$0xff]  ;;  %v101_v23 = vpack.c.bf16 %v85_v22, %v69_v20  ;;  %v2024_v25 = vld [vmem:[#allocation5 + $0x2c0] sm:$0xff]   ;;  %v2031_v32 = vld [vmem:[#allocation5 + $0x250] sm:$0xff]  }
  0x53   :  { %1778 = vmatpush3.bf16.msra.mxu1 %v1986_v27  ;;  %1757 = vmatprep.subr.bf16.mxu0 %v1987_v28  ;;  %v102_v17 = vpack.c.bf16 %v86_v15, %v70_v14  ;;  %v2025_v26 = vld [vmem:[#allocation5 + $0x200] sm:$0xff]   ;;  %v2027_v28 = vld [vmem:[#allocation5 + $0x248] sm:$0xff]   ;;  %v2032_v33 = vld [vmem:[#allocation5 + $0x2d0] sm:$0xff]  }
  0x54   :  { %1779 = vmatprep.subr.bf16.mxu1 %v1988_v29  ;;  %v2026_v27 = vld [vmem:[#allocation5 + $0x280] sm:$0xff]   ;;  %v2028_v29 = vld [vmem:[#allocation5 + $0x2c8] sm:$0xff]   ;;  %v2033_v34 = vld [vmem:[#allocation5 + $0x210] sm:$0xff]  }
  0x55   :  { %v2034_v35 = vld [vmem:[#allocation5 + $0x290] sm:$0xff]   ;;  %v2035_v36 = vld [vmem:[#allocation5 + $0x258] sm:$0xff]   ;;  %v2040_v41 = vld [vmem:[#allocation5 + $0x2e0] sm:$0xff]  }
  0x56   :  { %1758 = vmatpush3.bf16.msra.mxu0 %v1989_v30  ;;  %v2029_v30 = vld [vmem:[#allocation5 + $0x208] sm:$0xff]   ;;  %v2036_v37 = vld [vmem:[#allocation5 + $0x2d8] sm:$0xff]   ;;  %v2041_v42 = vld [vmem:[#allocation5 + $0x220] sm:$0xff]  }
  0x57   :  { %1780 = vmatpush3.bf16.msra.mxu1 %v1990_v31  ;;  %1787 = vmatprep.subr.bf16.mxu0 %v1991_v44  ;;  %v2030_v31 = vld [vmem:[#allocation5 + $0x288] sm:$0xff]   ;;  %v2037_v38 = vld [vmem:[#allocation5 + $0x218] sm:$0xff]   ;;  %v2063_v12 = vld [vmem:[#allocation5 + $0x350] sm:$0xff]  }
  0x58   :  { %1809 = vmatprep.subr.bf16.mxu1 %v1992_v45  ;;  %v2038_v39 = vld [vmem:[#allocation5 + $0x298] sm:$0xff]   ;;  %v2043_v44 = vld [vmem:[#allocation5 + $0x268] sm:$0xff]   ;;  %v2064_v13 = vld [vmem:[#allocation5 + $0x3d0] sm:$0xff]  }
  0x59   :  { %1175 = vmatmul.mubr.bf16.vlgmr.msra.gmra.mrb[0].mxu0 %v95_v40  ;;  %v2039_v40 = vld [vmem:[#allocation5 + $0x260] sm:$0xff]   ;;  %v2044_v45 = vld [vmem:[#allocation5 + $0x2e8] sm:$0xff]   ;;  %v2065_v14 = vld [vmem:[#allocation5 + $0x310] sm:$0xff]  }
  0x5a   :  { %1216 = vmatmul.mubr.bf16.vlgmr.msra.gmra.mrb[0].mxu1 %v97_v43  ;;  %1788 = vmatpush3.bf16.msra.mxu0 %v1993_v46  ;;  %v2042_v43 = vld [vmem:[#allocation5 + $0x2a0] sm:$0xff]   ;;  %v2045_v46 = vld [vmem:[#allocation5 + $0x228] sm:$0xff]   ;;  %v2066_v15 = vld [vmem:[#allocation5 + $0x390] sm:$0xff]  }
  0x5b   :  { %1810 = vmatpush3.bf16.msra.mxu1 %v1994_v47  ;;  %1789 = vmatprep.subr.bf16.mxu0 %v1995_v48  ;;  %v2046_v47 = vld [vmem:[#allocation5 + $0x2a8] sm:$0xff]   ;;  %v2047_v48 = vld [vmem:[#allocation5 + $0x270] sm:$0xff]   ;;  %v2069_v18 = vld [vmem:[#allocation5 + $0x318] sm:$0xff]  }
  0x5c   :  { %1811 = vmatprep.subr.bf16.mxu1 %v1996_v49  ;;  %1256 = vmatprep.mubr.bf16.mxu0 %v100_v16  ;;  %v2048_v49 = vld [vmem:[#allocation5 + $0x2f0] sm:$0xff]   ;;  %v2067_v16 = vld [vmem:[#allocation5 + $0x358] sm:$0xff]   ;;  %v2071_v20 = vld [vmem:[#allocation5 + $0x360] sm:$0xff]  }
  0x5d   :  { %1297 = vmatprep.mubr.bf16.mxu1 %v102_v17  ;;  %v2068_v17 = vld [vmem:[#allocation5 + $0x3d8] sm:$0xff]   ;;  %v2073_v22 = vld [vmem:[#allocation5 + $0x320] sm:$0xff]  }
  0x5e   :  { %1790 = vmatpush3.bf16.msra.mxu0 %v1997_v50  ;;  %v2049_v50 = vld [vmem:[#allocation5 + $0x230] sm:$0xff]   ;;  %v2070_v19 = vld [vmem:[#allocation5 + $0x398] sm:$0xff]  }
  0x5f   :  { %1812 = vmatpush3.bf16.msra.mxu1 %v1998_v51  ;;  %1791 = vmatprep.subr.bf16.mxu0 %v1999_v52  ;;  %v2050_v51 = vld [vmem:[#allocation5 + $0x2b0] sm:$0xff]   ;;  %v2051_v52 = vld [vmem:[#allocation5 + $0x278] sm:$0xff]  }
  0x60   :  { %1813 = vmatprep.subr.bf16.mxu1 %v2000_v53  ;;  %v2052_v53 = vld [vmem:[#allocation5 + $0x2f8] sm:$0xff]  }
  0x62   :  { %1792 = vmatpush3.bf16.msra.mxu0 %v2001_v54  ;;  %v2053_v54 = vld [vmem:[#allocation5 + $0x238] sm:$0xff]  }
  0x63   :  { %1814 = vmatpush3.bf16.msra.mxu1 %v2002_v55  ;;  %1793 = vmatprep.subr.bf16.mxu0 %v2003_v56  ;;  %v2054_v55 = vld [vmem:[#allocation5 + $0x2b8] sm:$0xff]   ;;  %v72_v56 = vld [vmem:[#allocation2 + $0x48] sm:$0xff] }
  0x64   :  { %1815 = vmatprep.subr.bf16.mxu1 %v2004_v57  ;;  %v88_v57 = vld [vmem:[#allocation2 + $0xc8] sm:$0xff] }
  0x66   :  { %1794 = vmatpush3.bf16.msra.mxu0 %v2005_v58  ;;  %v104_v58 = vpack.c.bf16 %v88_v57, %v72_v56  ;;  %v2094_v56 = vld [vmem:[#allocation7 + $0x38] sm:$0xff]  }
  0x67   :  { %1816 = vmatpush3.bf16.msra.mxu1 %v2006_v59  ;;  %1795 = vmatprep.subr.bf16.mxu0 %v2007_v60  ;;  %v74_v59 = vld [vmem:[#allocation2 + $0x58] sm:$0xff] }
  0x68   :  { %1817 = vmatprep.subr.bf16.mxu1 %v2008_v61  ;;  %v90_v60 = vld [vmem:[#allocation2 + $0xd8] sm:$0xff]  ;;  %v71_v61 = vld [vmem:[#allocation2 + $0x40] sm:$0xff] }
  0x6a   :  { %1796 = vmatpush3.bf16.msra.mxu0 %v2009_v62  ;;  %v106_v62 = vpack.c.bf16 %v90_v60, %v74_v59  ;;  %v1605_v59 = vld [vmem:[%s2295_s2] ss:$0 sm:$0xff] }
  0x6b   :  { %1818 = vmatpush3.bf16.msra.mxu1 %v2010_v63  ;;  %1797 = vmatprep.subr.bf16.mxu0 %v2011_v0  ;;  %v87_v63 = vld [vmem:[#allocation2 + $0xc0] sm:$0xff]  ;;  %v73_v0 = vld [vmem:[#allocation2 + $0x50] sm:$0xff] }
  0x6c   :  { %1819 = vmatprep.subr.bf16.mxu1 %v2012_v1  ;;  %v89_v1 = vld [vmem:[#allocation2 + $0xd0] sm:$0xff] }
  0x6e   :  { %1798 = vmatpush3.bf16.msra.mxu0 %v2013_v2  ;;  %v103_v2 = vpack.c.bf16 %v87_v63, %v71_v61 }
  0x6f   :  { %1820 = vmatpush3.bf16.msra.mxu1 %v2014_v3  ;;  %1799 = vmatprep.subr.bf16.mxu0 %v2015_v4  ;;  %v105_v3 = vpack.c.bf16 %v89_v1, %v73_v0  ;;  %v2055_v4 = vld [vmem:[#allocation5 + $0x340] sm:$0xff]  }
  0x70   :  { %1821 = vmatprep.subr.bf16.mxu1 %v2016_v5  ;;  %v2056_v5 = vld [vmem:[#allocation5 + $0x3c0] sm:$0xff]  }
  0x72   :  { %1800 = vmatpush3.bf16.msra.mxu0 %v2017_v6  ;;  %v2057_v6 = vld [vmem:[#allocation5 + $0x300] sm:$0xff]  }
  0x73   :  { %1822 = vmatpush3.bf16.msra.mxu1 %v2018_v7  ;;  %1801 = vmatprep.subr.bf16.mxu0 %v2019_v8  ;;  %v2058_v7 = vld [vmem:[#allocation5 + $0x380] sm:$0xff]   ;;  %v2059_v8 = vld [vmem:[#allocation5 + $0x348] sm:$0xff]  }
  0x74   :  { %1823 = vmatprep.subr.bf16.mxu1 %v2020_v9  ;;  %v2060_v9 = vld [vmem:[#allocation5 + $0x3c8] sm:$0xff]  }
  0x76   :  { %1802 = vmatpush3.bf16.msra.mxu0 %v2021_v10  ;;  %v2061_v10 = vld [vmem:[#allocation5 + $0x308] sm:$0xff]  }
  0x77   :  { %1824 = vmatpush3.bf16.msra.mxu1 %v2022_v11  ;;  %1831 = vmatprep.subr.bf16.mxu0 %v2023_v24  ;;  %v2062_v11 = vld [vmem:[#allocation5 + $0x388] sm:$0xff]  }
  0x78   :  { %1853 = vmatprep.subr.bf16.mxu1 %v2024_v25  ;;  %v2075_v24 = vld [vmem:[#allocation5 + $0x368] sm:$0xff]  }
  0x79   :  { %1257 = vmatmul.mubr.bf16.vlgmr.msra.gmra.mrb[4].mxu0 %v99_v21  ;;  %v2072_v21 = vld [vmem:[#allocation5 + $0x3e0] sm:$0xff]   ;;  %v2076_v25 = vld [vmem:[#allocation5 + $0x3e8] sm:$0xff]  }
  0x7a   :  { %1298 = vmatmul.mubr.bf16.vlgmr.msra.gmra.mrb[4].mxu1 %v101_v23  ;;  %1832 = vmatpush3.bf16.msra.mxu0 %v2025_v26  ;;  %v2074_v23 = vld [vmem:[#allocation5 + $0x3a0] sm:$0xff]   ;;  %v2077_v26 = vld [vmem:[#allocation5 + $0x328] sm:$0xff]  }
  0x7b   :  { %1854 = vmatpush3.bf16.msra.mxu1 %v2026_v27  ;;  %1833 = vmatprep.subr.bf16.mxu0 %v2027_v28  ;;  %v2078_v27 = vld [vmem:[#allocation5 + $0x3a8] sm:$0xff]   ;;  %v2079_v28 = vld [vmem:[#allocation5 + $0x370] sm:$0xff]  }
  0x7c   :  { %1855 = vmatprep.subr.bf16.mxu1 %v2028_v29  ;;  %1338 = vmatprep.mubr.bf16.mxu0 %v104_v58  ;;  %v2080_v29 = vld [vmem:[#allocation5 + $0x3f0] sm:$0xff]  }
  0x7d   :  { %1379 = vmatprep.mubr.bf16.mxu1 %v106_v62 }
  0x7e   :  { %1834 = vmatpush3.bf16.msra.mxu0 %v2029_v30  ;;  %v2081_v30 = vld [vmem:[#allocation5 + $0x330] sm:$0xff]  }
  0x7f   :  { %1856 = vmatpush3.bf16.msra.mxu1 %v2030_v31  ;;  %1835 = vmatprep.subr.bf16.mxu0 %v2031_v32  ;;  %v2082_v31 = vld [vmem:[#allocation5 + $0x3b0] sm:$0xff]   ;;  %v2083_v32 = vld [vmem:[#allocation5 + $0x378] sm:$0xff]  }
  0x80   :  { %1857 = vmatprep.subr.bf16.mxu1 %v2032_v33  ;;  %v2084_v33 = vld [vmem:[#allocation5 + $0x3f8] sm:$0xff]  }
  0x82   :  { %1836 = vmatpush3.bf16.msra.mxu0 %v2033_v34  ;;  %v2085_v34 = vld [vmem:[#allocation5 + $0x338] sm:$0xff]  }
  0x83   :  { %1858 = vmatpush3.bf16.msra.mxu1 %v2034_v35  ;;  %1837 = vmatprep.subr.bf16.mxu0 %v2035_v36  ;;  %v2086_v35 = vld [vmem:[#allocation5 + $0x3b8] sm:$0xff]   ;;  %v76_v36 = vld [vmem:[#allocation2 + $0x68] sm:$0xff] }
  0x84   :  { %1859 = vmatprep.subr.bf16.mxu1 %v2036_v37  ;;  %v92_v37 = vld [vmem:[#allocation2 + $0xe8] sm:$0xff] }
  0x86   :  { %1838 = vmatpush3.bf16.msra.mxu0 %v2037_v38  ;;  %v78_v38 = vld [vmem:[#allocation2 + $0x78] sm:$0xff] }
  0x87   :  { %1860 = vmatpush3.bf16.msra.mxu1 %v2038_v39  ;;  %1839 = vmatprep.subr.bf16.mxu0 %v2039_v40  ;;  %v108_v39 = vpack.c.bf16 %v92_v37, %v76_v36  ;;  %v94_v40 = vld [vmem:[#allocation2 + $0xf8] sm:$0xff] }
  0x88   :  { %1861 = vmatprep.subr.bf16.mxu1 %v2040_v41  ;;  %v75_v41 = vld [vmem:[#allocation2 + $0x60] sm:$0xff] }
  0x8a   :  { %1840 = vmatpush3.bf16.msra.mxu0 %v2041_v42  ;;  %v91_v42 = vld [vmem:[#allocation2 + $0xe0] sm:$0xff] }
  0x8b   :  { %1862 = vmatpush3.bf16.msra.mxu1 %v2042_v43  ;;  %1841 = vmatprep.subr.bf16.mxu0 %v2043_v44  ;;  %v110_v43 = vpack.c.bf16 %v94_v40, %v78_v38  ;;  %v107_v44 = vpack.c.bf16 %v91_v42, %v75_v41 }
  0x8c   :  { %1863 = vmatprep.subr.bf16.mxu1 %v2044_v45  ;;  %v77_v45 = vld [vmem:[#allocation2 + $0x70] sm:$0xff] }
  0x8e   :  { %1842 = vmatpush3.bf16.msra.mxu0 %v2045_v46  ;;  %v93_v46 = vld [vmem:[#allocation2 + $0xf0] sm:$0xff] }
  0x8f   :  { %1864 = vmatpush3.bf16.msra.mxu1 %v2046_v47  ;;  %1843 = vmatprep.subr.bf16.mxu0 %v2047_v48  ;;  %v109_v47 = vpack.c.bf16 %v93_v46, %v77_v45  ;;  %v2087_v48 = vld [vmem:[#allocation7] sm:$0xff]  }
  0x90   :  { %1865 = vmatprep.subr.bf16.mxu1 %v2048_v49  ;;  %v2196_v49 = vmov 0.0  }
  0x92   :  { %1844 = vmatpush3.bf16.msra.mxu0 %v2049_v50  ;;  %v2088_v50 = vld [vmem:[#allocation7 + $0x8] sm:$0xff]  }
  0x93   :  { %1866 = vmatpush3.bf16.msra.mxu1 %v2050_v51  ;;  %1845 = vmatprep.subr.bf16.mxu0 %v2051_v52  ;;  %v2089_v51 = vld [vmem:[#allocation7 + $0x10] sm:$0xff]   ;;  %v2090_v52 = vld [vmem:[#allocation7 + $0x18] sm:$0xff]  }
  0x94   :  { %1867 = vmatprep.subr.bf16.mxu1 %v2052_v53  ;;  %v2091_v53 = vld [vmem:[#allocation7 + $0x20] sm:$0xff]  }
  0x96   :  { %1846 = vmatpush3.bf16.msra.mxu0 %v2053_v54  ;;  %v2092_v54 = vld [vmem:[#allocation7 + $0x28] sm:$0xff]  }
  0x97   :  { %1868 = vmatpush3.bf16.msra.mxu1 %v2054_v55  ;;  %1875 = vmatprep.subr.bf16.mxu0 %v2055_v4  ;;  %v2093_v55 = vld [vmem:[#allocation7 + $0x30] sm:$0xff]  }
  0x98   :  { %1897 = vmatprep.subr.bf16.mxu1 %v2056_v5 }
  0x99   :  { %1339 = vmatmul.mubr.bf16.vlgmr.msra.gmra.mrb[8].mxu0 %v103_v2 }
  0x9a   :  { %1380 = vmatmul.mubr.bf16.vlgmr.msra.gmra.mrb[8].mxu1 %v105_v3  ;;  %1876 = vmatpush3.bf16.msra.mxu0 %v2057_v6 }
  0x9b   :  { %1898 = vmatpush3.bf16.msra.mxu1 %v2058_v7  ;;  %1877 = vmatprep.subr.bf16.mxu0 %v2059_v8 }
  0x9c   :  { %1899 = vmatprep.subr.bf16.mxu1 %v2060_v9  ;;  %1420 = vmatprep.mubr.bf16.mxu0 %v108_v39 }
  0x9d   :  { %1461 = vmatprep.mubr.bf16.mxu1 %v110_v43 }
  0x9e   :  { %1878 = vmatpush3.bf16.msra.mxu0 %v2061_v10 }
  0x9f   :  { %1900 = vmatpush3.bf16.msra.mxu1 %v2062_v11  ;;  %1879 = vmatprep.subr.bf16.mxu0 %v2063_v12 }
  0xa0   :  { %1901 = vmatprep.subr.bf16.mxu1 %v2064_v13 }
  0xa2   :  { %1880 = vmatpush3.bf16.msra.mxu0 %v2065_v14 }
  0xa3   :  { %1902 = vmatpush3.bf16.msra.mxu1 %v2066_v15  ;;  %1881 = vmatprep.subr.bf16.mxu0 %v2067_v16 }
  0xa4   :  { %1903 = vmatprep.subr.bf16.mxu1 %v2068_v17 }
  0xa6   :  { %1882 = vmatpush3.bf16.msra.mxu0 %v2069_v18 }
  0xa7   :  { %1904 = vmatpush3.bf16.msra.mxu1 %v2070_v19  ;;  %1883 = vmatprep.subr.bf16.mxu0 %v2071_v20 }
  0xa8   :  { %1905 = vmatprep.subr.bf16.mxu1 %v2072_v21 }
  0xaa   :  { %1884 = vmatpush3.bf16.msra.mxu0 %v2073_v22 }
  0xab   :  { %1906 = vmatpush3.bf16.msra.mxu1 %v2074_v23  ;;  %1885 = vmatprep.subr.bf16.mxu0 %v2075_v24 }
  0xac   :  { %1907 = vmatprep.subr.bf16.mxu1 %v2076_v25 }
  0xae   :  { %1886 = vmatpush3.bf16.msra.mxu0 %v2077_v26 }
  0xaf   :  { %1908 = vmatpush3.bf16.msra.mxu1 %v2078_v27  ;;  %1887 = vmatprep.subr.bf16.mxu0 %v2079_v28 }
  0xb0   :  { %1909 = vmatprep.subr.bf16.mxu1 %v2080_v29 }
  0xb2   :  { %1888 = vmatpush3.bf16.msra.mxu0 %v2081_v30 }
  0xb3   :  { %1910 = vmatpush3.bf16.msra.mxu1 %v2082_v31  ;;  %1889 = vmatprep.subr.bf16.mxu0 %v2083_v32 }
  0xb4   :  { %1911 = vmatprep.subr.bf16.mxu1 %v2084_v33 }
  0xb6   :  { %1890 = vmatpush3.bf16.msra.mxu0 %v2085_v34 }
  0xb7   :  { %1912 = vmatpush3.bf16.msra.mxu1 %v2086_v35  ;;  %1928 = vmatprep.subr.bf16.mxu0 %v2196_v49 }
  0xb9   :  { %1421 = vmatmul.mubr.bf16.vlgmr.msra.gmra.mrb[12].mxu0 %v107_v44 }
  0xba   :  { %1462 = vmatmul.mubr.bf16.vlgmr.msra.gmra.mrb[12].mxu1 %v109_v47  ;;  %1929 = vmatpush3.bf16.msra.mxu0 %v2087_v48 }
  0xbb   :  { %1930 = vmatprep.subr.bf16.mxu0 %v2196_v49  ;;  %1944 = vmatprep.mubr.msk.bf16.mxu0 %vm2197_vm0, %v2196_v49 }
  0xbe   :  { %1931 = vmatpush3.bf16.msra.mxu0 %v2088_v50 }
  0xbf   :  { %1932 = vmatprep.subr.bf16.mxu0 %v2196_v49 }
  0xc2   :  { %1933 = vmatpush3.bf16.msra.mxu0 %v2089_v51 }
  0xc3   :  { %1934 = vmatprep.subr.bf16.mxu0 %v2196_v49 }
  0xc6   :  { %1935 = vmatpush3.bf16.msra.mxu0 %v2090_v52 }
  0xc7   :  { %1936 = vmatprep.subr.bf16.mxu0 %v2196_v49 }
  0xca   :  { %1937 = vmatpush3.bf16.msra.mxu0 %v2091_v53 }
  0xcb   :  { %1938 = vmatprep.subr.bf16.mxu0 %v2196_v49 }
  0xce   :  { %1939 = vmatpush3.bf16.msra.mxu0 %v2092_v54 }
  0xcf   :  { %1940 = vmatprep.subr.bf16.mxu0 %v2196_v49 }
  0xd2   :  { %1941 = vmatpush3.bf16.msra.mxu0 %v2093_v55 }
  0xd3   :  { %1942 = vmatprep.subr.bf16.mxu0 %v2196_v49 }
  0xd6   :  { %1943 = vmatpush3.bf16.msra.mxu0 %v2094_v56 }
 0x12c   :  { %v1759_v57 = vpop.f32.mrb[0].mxu0 }
 0x12d   :  { %v1781_v58 = vpop.f32.mrb[0].mxu1  ;;  %v1760_v60 = vpop.f32.mrb[1].mxu0 }
 0x12e   :  { %v1761_v61 = vadd.f32 %v1760_v60, %v1759_v57  ;;  %v1782_v62 = vpop.f32.mrb[1].mxu1  ;;  %v1762_v63 = vpop.f32.mrb[2].mxu0 }
 0x12f   :  { %v1783_v0 = vadd.f32 %v1782_v62, %v1781_v58  ;;  %v1784_v1 = vpop.f32.mrb[2].mxu1  ;;  %v1763_v2 = vpop.f32.mrb[3].mxu0 }
 0x130   :  { %v1177_v3 = vadd.f32 %v1761_v61, %v1605_v59  ;;  %v1764_v4 = vadd.f32 %v1763_v2, %v1762_v63  ;;  %v1785_v5 = vpop.f32.mrb[3].mxu1  ;;  %v1734_v61 = vld [vmem:[%s2297_s4] ss:$0 sm:$0xff] }
 0x131   :  { %v1786_v6 = vadd.f32 %v1785_v5, %v1784_v1 }
 0x132   :  { %v1218_v7 = vadd.f32 %v1783_v0, %v1177_v3  ;;  %v1180_v8 = vadd.f32 %v1764_v4, %v1605_v59 }
 0x134   :  { %v1221_v9 = vadd.f32 %v1786_v6, %v1180_v8 }
 0x14c   :  { %v1803_v10 = vpop.f32.mrb[4].mxu0 }
 0x14d   :  { %v1825_v11 = vpop.f32.mrb[4].mxu1  ;;  %v1804_v12 = vpop.f32.mrb[5].mxu0 }
 0x14e   :  { %v1805_v13 = vadd.f32 %v1804_v12, %v1803_v10  ;;  %v1826_v14 = vpop.f32.mrb[5].mxu1  ;;  %v1806_v15 = vpop.f32.mrb[6].mxu0 }
 0x14f   :  { %v1827_v16 = vadd.f32 %v1826_v14, %v1825_v11  ;;  %v1828_v17 = vpop.f32.mrb[6].mxu1  ;;  %v1807_v18 = vpop.f32.mrb[7].mxu0 }
 0x150   :  { %v1259_v19 = vadd.f32 %v1805_v13, %v1218_v7  ;;  %v1808_v20 = vadd.f32 %v1807_v18, %v1806_v15  ;;  %v1829_v21 = vpop.f32.mrb[7].mxu1 }
 0x151   :  { %v1830_v22 = vadd.f32 %v1829_v21, %v1828_v17 }
 0x152   :  { %v1300_v23 = vadd.f32 %v1827_v16, %v1259_v19  ;;  %v1262_v24 = vadd.f32 %v1808_v20, %v1221_v9 }
 0x154   :  { %v1303_v25 = vadd.f32 %v1830_v22, %v1262_v24 }
 0x16c   :  { %v1847_v26 = vpop.f32.mrb[8].mxu0 }
 0x16d   :  { %v1869_v27 = vpop.f32.mrb[8].mxu1  ;;  %v1848_v28 = vpop.f32.mrb[9].mxu0 }
 0x16e   :  { %v1870_v29 = vpop.f32.mrb[9].mxu1  ;;  %v1849_v30 = vadd.f32 %v1848_v28, %v1847_v26  ;;  %v1850_v32 = vpop.f32.mrb[10].mxu0 }
 0x16f   :  { %v1871_v31 = vadd.f32 %v1870_v29, %v1869_v27  ;;  %v1872_v33 = vpop.f32.mrb[10].mxu1  ;;  %v1851_v34 = vpop.f32.mrb[11].mxu0 }
 0x170   :  { %v1873_v35 = vpop.f32.mrb[11].mxu1  ;;  %v1341_v36 = vadd.f32 %v1849_v30, %v1300_v23  ;;  %v1852_v37 = vadd.f32 %v1851_v34, %v1850_v32 }
 0x171   :  { %v1874_v38 = vadd.f32 %v1873_v35, %v1872_v33 }
 0x172   :  { %v1382_v39 = vadd.f32 %v1871_v31, %v1341_v36  ;;  %v1344_v40 = vadd.f32 %v1852_v37, %v1303_v25 }
 0x174   :  { %v1385_v41 = vadd.f32 %v1874_v38, %v1344_v40 }
 0x18c   :  { %v1891_v42 = vpop.f32.mrb[12].mxu0 }
 0x18d   :  { %v1913_v43 = vpop.f32.mrb[12].mxu1  ;;  %v1892_v44 = vpop.f32.mrb[13].mxu0 }
 0x18e   :  { %v1893_v45 = vadd.f32 %v1892_v44, %v1891_v42  ;;  %v1914_v46 = vpop.f32.mrb[13].mxu1  ;;  %v1894_v47 = vpop.f32.mrb[14].mxu0 }
 0x18f   :  { %v1915_v48 = vadd.f32 %v1914_v46, %v1913_v43  ;;  %v1916_v49 = vpop.f32.mrb[14].mxu1  ;;  %v1895_v50 = vpop.f32.mrb[15].mxu0 }
 0x190   :  { %v1423_v51 = vadd.f32 %v1893_v45, %v1382_v39  ;;  %v1896_v52 = vadd.f32 %v1895_v50, %v1894_v47  ;;  %v1917_v53 = vpop.f32.mrb[15].mxu1 }
 0x191   :  { %v1918_v54 = vadd.f32 %v1917_v53, %v1916_v49 }
 0x192   :  { %v1464_v55 = vadd.f32 %v1915_v48, %v1423_v51  ;;  %v1426_v56 = vadd.f32 %v1896_v52, %v1385_v41 }
 0x194   :  { %v1467_v57 = vadd.f32 %v1918_v54, %v1426_v56  ;;  %v1470_v58 = vmax.f32 %v1464_v55, 0.0 }
 0x196   :  { %v1471_v59 = vmax.f32 %v1467_v57, 0.0 }
 0x198   :  { %v1472_v60 = vpack.c.bf16 %v1471_v59, %v1470_v58 }
 0x19a   :  { %1945 = vmatmul.mubr.bf16.vlgmr.msra.gmra.mrb[16].mxu0 %v1472_v60 }
 0x26d   :  { %v1578_v62 = vpop.f32.mrb[16].mxu0 }
 0x26e   :  { %v1579_v63 = vadd.f32 %v1734_v61, %v1578_v62  ;;  %v1946_v0 = vpop.f32.mrb[17].mxu0 }
 0x26f   :  { %v1581_v1 = vpop.f32.mrb[18].mxu0 }
 0x270   :  { %1585 = vst [vmem:[#allocation8] sm:$0xff] %v1579_v63  ;;  %v1582_v2 = vadd.f32 %v1734_v61, %v1581_v1  ;;  %v1947_v3 = vpop.f32.mrb[19].mxu0 }
 0x272   :  { %1586 = vst [vmem:[#allocation8 + $0x8] sm:$0xff] %v1582_v2 }
 0x273   :  { %2172 = shalt.err (!%p2169_p0)
}
 0x274   :  { %s2173_s12 = scalar_lea.hbm %s2298_s5, 256 }
 0x275   :  { %p2174_p1 = scmp.ne.s32.totalorder %s2298_s5, %s2173_s12  ;;  %p2177_p2 = scmp.lt.u32.totalorder %s2173_s12, %s2298_s5 }
 0x277   :  { %p2179_p3 = pnand %p2177_p2, %p2174_p1 }
 0x279   :  { %2182 = shalt.err (!%p2179_p3)
}
 0x27a   :  { %s2199_s1 = smov 8  }
 0x27b   :  { %1598 = dma.vmem_to_hbm [thread:$0]  %s1593_s9, 256, %s2298_s5, [#allocation4], %s2194_s17, %s2194_s17, %s2199_s1  }
 0x27c   :  { %2187 = dma.done.wait [#allocation4], 256  }
 0x27d   :  { %2188 = vsyncadd [#allocation4], 4294967040 }
 0x27e   :  { %1602 = vsyncpa [#allocation3], 1 }
 0x27f   :  { %1603 = vsyncpa [#allocation6], 1 }
 0x280   :  { %1604 = vsyncpa [#allocation4], 1 }

</bundles_post_ra>
